<compile_context>
chip_gen: v6e
topology: v6e:2x2x1
jax: 0.10.0
libtpu: 0.0.40
codegen_flags: <defaults>
</compile_context>

<pallas_src>
import functools

import jax
import jax.numpy as jnp
import numpy as np
from jax import lax
from jax.experimental import pallas as pl
from jax.experimental.pallas import tpu as pltpu

EPS = 1e-5                      # fla RMSNorm / FusedRMSNormSwishGate default eps
GATE_LOGIT_NORMALIZER = 16.0    # fla SimpleGatedLinearAttention default
MATMUL_VMEM_LIMIT = 64 * 1024 * 1024   # re-derive (halve weight tiles) for v7x's 64 MiB VMEM


# --------------------------------------------------------------------------
# Tiled matmul (bf16 MXU operands, f32 accumulator)
# --------------------------------------------------------------------------
def _matmul_kernel(x_ref, w_ref, o_ref, acc_ref):
    @pl.when(pl.program_id(2) == 0)
    def _():
        acc_ref[...] = jnp.zeros_like(acc_ref)

    acc_ref[...] += jnp.dot(x_ref[...], w_ref[...],
                            preferred_element_type=jnp.float32)

    @pl.when(pl.program_id(2) == pl.num_programs(2) - 1)
    def _():
        o_ref[...] = acc_ref[...].astype(o_ref.dtype)


def linear(x, w, *, tm=256, tn=256, tk=512):
    # x: (N, Din), w: (Din, Dout)   (torch weight already transposed)
    n, din = x.shape
    dout = w.shape[1]
    tm = min(tm, n)
    tn = min(tn, dout)
    tk = min(tk, din)
    if din % tk:
        tk = din   # TODO(synk): ragged K tiles would need zero-masking before accumulate
    grid = (pl.cdiv(n, tm), pl.cdiv(dout, tn), din // tk)
    return pl.pallas_call(
        _matmul_kernel,
        out_shape=jax.ShapeDtypeStruct((n, dout), jnp.float32),
        grid=grid,
        in_specs=[pl.BlockSpec((tm, tk), lambda i, j, k: (i, k)),
                  pl.BlockSpec((tk, tn), lambda i, j, k: (k, j))],
        out_specs=pl.BlockSpec((tm, tn), lambda i, j, k: (i, j)),
        scratch_shapes=[pltpu.VMEM((tm, tn), jnp.float32)],
        compiler_params=pltpu.CompilerParams(
            dimension_semantics=("parallel", "parallel", "arbitrary"),
            vmem_limit_bytes=MATMUL_VMEM_LIMIT),
    )(x.astype(jnp.bfloat16), w.astype(jnp.bfloat16))


# --------------------------------------------------------------------------
# Row-tiled RMSNorm kernels
# --------------------------------------------------------------------------
def _rmsnorm_kernel(x_ref, w_ref, o_ref):
    x = x_ref[...]
    ms = jnp.mean(x * x, axis=-1, keepdims=True)
    o_ref[...] = x * lax.rsqrt(ms + EPS) * w_ref[...]


def rmsnorm(x, w, *, tm=512):
    n, d = x.shape
    tm = min(tm, n)
    return pl.pallas_call(
        _rmsnorm_kernel,
        out_shape=jax.ShapeDtypeStruct((n, d), x.dtype),
        grid=(pl.cdiv(n, tm),),
        in_specs=[pl.BlockSpec((tm, d), lambda i: (i, 0)),
                  pl.BlockSpec((1, d), lambda i: (0, 0))],
        out_specs=pl.BlockSpec((tm, d), lambda i: (i, 0)),
        compiler_params=pltpu.CompilerParams(dimension_semantics=("parallel",)),
    )(x, w.reshape(1, d))


def _rmsnorm_residual_kernel(x_ref, r_ref, w_ref, o_ref, res_ref):
    # fla RMSNorm(x, residual, prenorm=True): res = x + residual; out = rmsnorm(res) * w
    z = x_ref[...] + r_ref[...]
    res_ref[...] = z
    ms = jnp.mean(z * z, axis=-1, keepdims=True)
    o_ref[...] = z * lax.rsqrt(ms + EPS) * w_ref[...]


def rmsnorm_residual(x, r, w, *, tm=512):
    n, d = x.shape
    tm = min(tm, n)
    return pl.pallas_call(
        _rmsnorm_residual_kernel,
        out_shape=(jax.ShapeDtypeStruct((n, d), x.dtype),
                   jax.ShapeDtypeStruct((n, d), x.dtype)),
        grid=(pl.cdiv(n, tm),),
        in_specs=[pl.BlockSpec((tm, d), lambda i: (i, 0)),
                  pl.BlockSpec((tm, d), lambda i: (i, 0)),
                  pl.BlockSpec((1, d), lambda i: (0, 0))],
        out_specs=(pl.BlockSpec((tm, d), lambda i: (i, 0)),
                   pl.BlockSpec((tm, d), lambda i: (i, 0))),
        compiler_params=pltpu.CompilerParams(dimension_semantics=("parallel",)),
    )(x, r, w.reshape(1, d))


# --------------------------------------------------------------------------
# Chunked gated linear attention with carried (Dk, Dv) state
#   S_c = exp(G_tot) S_{c-1} + sum_j exp(G_tot - G_j) k_j^T v_j
#   o_i = scale * [ exp(G_i) q_i S_{c-1} + sum_{j<=i} exp(G_i - G_j) (q_i.k_j) v_j ]
# --------------------------------------------------------------------------
def _gla_chunk_kernel(q_ref, k_ref, v_ref, gl_ref, o_ref, s_ref, *, scale):
    @pl.when(pl.program_id(1) == 0)
    def _():
        s_ref[...] = jnp.zeros_like(s_ref)

    q = q_ref[0]                         # (Tc, Dk) bf16
    k = k_ref[0]                         # (Tc, Dk) bf16
    v = v_ref[0]                         # (Tc, Dv) bf16
    gl = gl_ref[0]                       # (1, Tc)  f32 per-step log-gates
    tc = q.shape[0]

    row = lax.broadcasted_iota(jnp.int32, (tc, tc), 0)
    col = lax.broadcasted_iota(jnp.int32, (tc, tc), 1)
    causal = row >= col
    low_f = (col <= row).astype(jnp.float32)      # [i, m] = (m <= i)
    up_f = (row <= col).astype(jnp.float32)       # [m, j] = (m <= j)

    # chunk-local cumulative log-gates, as a column (Tc,1) and a row (1,Tc)
    g_col = lax.dot_general(low_f, gl, (((1,), (1,)), ((), ())),
                            preferred_element_type=jnp.float32)        # (Tc, 1)
    g_row = jnp.dot(gl, up_f, preferred_element_type=jnp.float32)      # (1, Tc)
    g_tot = jnp.sum(gl, axis=-1, keepdims=True)                        # (1, 1)

    # intra-chunk: ((q k^T) * exp(G_i - G_j) * causal) v   -- mask BEFORE exp
    scores = lax.dot_general(q, k, (((1,), (1,)), ((), ())),
                             preferred_element_type=jnp.float32)       # (Tc, Tc)
    decay = jnp.exp(jnp.where(causal, g_col - g_row, -jnp.inf))
    p = (scores * decay * scale).astype(jnp.bfloat16)
    o_intra = jnp.dot(p, v, preferred_element_type=jnp.float32)        # (Tc, Dv)

    # inter-chunk contribution of the carried state
    qs = q.astype(jnp.float32) * (scale * jnp.exp(g_col))              # (Tc, Dk) f32
    o_inter = jnp.dot(qs, s_ref[...], preferred_element_type=jnp.float32)

    o_ref[0] = (o_intra + o_inter).astype(o_ref.dtype)

    # carry the state forward
    krs = (k.astype(jnp.float32) * jnp.exp(g_tot - g_col)).astype(jnp.bfloat16)
    kv = lax.dot_general(krs, v, (((0,), (0,)), ((), ())),
                         preferred_element_type=jnp.float32)           # (Dk, Dv)
    s_ref[...] = s_ref[...] * jnp.exp(g_tot) + kv


def gla_attention(q, k, v, glog, *, scale, chunk=128):
    # q, k: (BH, T, Dk); v: (BH, T, Dv); glog: (BH, 1, T) per-step log-gates
    bh, t, dk = q.shape
    dv = v.shape[-1]
    tc = min(chunk, t)
    if t % tc:
        tc = t   # TODO(synk): ragged final chunk needs masking of padded K/V rows
    nc = t // tc
    kernel = functools.partial(_gla_chunk_kernel, scale=scale)
    return pl.pallas_call(
        kernel,
        out_shape=jax.ShapeDtypeStruct((bh, t, dv), jnp.float32),
        grid=(bh, nc),
        in_specs=[pl.BlockSpec((1, tc, dk), lambda i, c: (i, c, 0)),
                  pl.BlockSpec((1, tc, dk), lambda i, c: (i, c, 0)),
                  pl.BlockSpec((1, tc, dv), lambda i, c: (i, c, 0)),
                  pl.BlockSpec((1, 1, tc), lambda i, c: (i, 0, c))],
        out_specs=pl.BlockSpec((1, tc, dv), lambda i, c: (i, c, 0)),
        scratch_shapes=[pltpu.VMEM((dk, dv), jnp.float32)],
        compiler_params=pltpu.CompilerParams(
            dimension_semantics=("parallel", "arbitrary")),
    )(q.astype(jnp.bfloat16), k.astype(jnp.bfloat16), v.astype(jnp.bfloat16), glog)


# --------------------------------------------------------------------------
# Lane-dense per-head RMSNorm + swish output gate on the (B*T, D) layout
# (per-head mean-square via a tiny (D, H) segment matmul; no head_dim<128 stores)
# --------------------------------------------------------------------------
def _gnorm_swish_gate_kernel(x_ref, g_ref, w_ref, seg_ref, o_ref, *, head_dim):
    x = x_ref[...]
    g = g_ref[...]
    seg = seg_ref[...]                                                   # (D, H)
    ssq = jnp.dot(x * x, seg, preferred_element_type=jnp.float32)        # (tm, H)
    inv = lax.rsqrt(ssq * (1.0 / head_dim) + EPS)                        # (tm, H)
    inv_full = lax.dot_general(inv, seg, (((1,), (1,)), ((), ())),
                               preferred_element_type=jnp.float32)       # (tm, D)
    xn = x * inv_full * w_ref[...]
    o_ref[...] = xn * (g * jax.nn.sigmoid(g))


def gnorm_swish_gate(x, g, w_head, *, num_heads, tm=512):
    n, d = x.shape
    dv = d // num_heads
    tm = min(tm, n)
    w_full = jnp.tile(w_head, num_heads).reshape(1, d)
    seg = (jnp.arange(d)[:, None] // dv == jnp.arange(num_heads)[None, :]
           ).astype(jnp.float32)                                          # (D, H)
    kernel = functools.partial(_gnorm_swish_gate_kernel, head_dim=dv)
    return pl.pallas_call(
        kernel,
        out_shape=jax.ShapeDtypeStruct((n, d), x.dtype),
        grid=(pl.cdiv(n, tm),),
        in_specs=[pl.BlockSpec((tm, d), lambda i: (i, 0)),
                  pl.BlockSpec((tm, d), lambda i: (i, 0)),
                  pl.BlockSpec((1, d), lambda i: (0, 0)),
                  pl.BlockSpec((d, num_heads), lambda i: (0, 0))],
        out_specs=pl.BlockSpec((tm, d), lambda i: (i, 0)),
        compiler_params=pltpu.CompilerParams(dimension_semantics=("parallel",)),
    )(x, g, w_full, seg)


# --------------------------------------------------------------------------
# Fused, tiled SwiGLU with residual-add epilogue
#   out = res + silu(x @ wg) * (x @ wu) @ wd     (DI reduction accumulated on-chip)
# --------------------------------------------------------------------------
def _swiglu_kernel(x_ref, wg_ref, wu_ref, wd_ref, res_ref, o_ref, acc_ref):
    @pl.when(pl.program_id(1) == 0)
    def _():
        acc_ref[...] = jnp.zeros_like(acc_ref)

    x = x_ref[...]
    a = jnp.dot(x, wg_ref[...], preferred_element_type=jnp.float32)
    u = jnp.dot(x, wu_ref[...], preferred_element_type=jnp.float32)
    h = (a * jax.nn.sigmoid(a) * u).astype(jnp.bfloat16)
    acc_ref[...] += jnp.dot(h, wd_ref[...], preferred_element_type=jnp.float32)

    @pl.when(pl.program_id(1) == pl.num_programs(1) - 1)
    def _():
        o_ref[...] = acc_ref[...] + res_ref[...]


def swiglu(x, wg, wu, wd, res, *, tm=256, ti=256):
    n, d = x.shape
    di = wg.shape[1]
    tm = min(tm, n)
    ti = min(ti, di)
    if di % ti:
        ti = di   # TODO(synk): ragged DI reduction tiles would need masking
    grid = (pl.cdiv(n, tm), di // ti)
    return pl.pallas_call(
        _swiglu_kernel,
        out_shape=jax.ShapeDtypeStruct((n, d), jnp.float32),
        grid=grid,
        in_specs=[pl.BlockSpec((tm, d), lambda i, j: (i, 0)),
                  pl.BlockSpec((d, ti), lambda i, j: (0, j)),
                  pl.BlockSpec((d, ti), lambda i, j: (0, j)),
                  pl.BlockSpec((ti, d), lambda i, j: (j, 0)),
                  pl.BlockSpec((tm, d), lambda i, j: (i, 0))],
        out_specs=pl.BlockSpec((tm, d), lambda i, j: (i, 0)),
        scratch_shapes=[pltpu.VMEM((tm, d), jnp.float32)],
        compiler_params=pltpu.CompilerParams(
            dimension_semantics=("parallel", "arbitrary"),
            vmem_limit_bytes=MATMUL_VMEM_LIMIT),
    )(x.astype(jnp.bfloat16), wg.astype(jnp.bfloat16),
      wu.astype(jnp.bfloat16), wd.astype(jnp.bfloat16), res)


# --------------------------------------------------------------------------
# GLABlock forward (Pallas path)
# --------------------------------------------------------------------------
def gla_block_forward(x, params, *, num_heads):
    b, t, d = x.shape
    h = num_heads
    dk = dv = d // h
    scale = dk ** -0.5

    xf = x.reshape(b * t, d)
    residual = xf

    # attn_norm
    hn = rmsnorm(xf, params["attn_norm_w"])

    # fused q/k/v/g/gk projections (hn read once)
    w_cat = jnp.concatenate([params["q_w"], params["k_w"], params["v_w"],
                             params["g_w"], params["gk_w"]], axis=1)
    proj = linear(hn, w_cat)                                     # (B*T, 4D + H)
    q = proj[:, 0 * d:1 * d]
    k = proj[:, 1 * d:2 * d]
    v = proj[:, 2 * d:3 * d]
    g = proj[:, 3 * d:4 * d]
    gk = proj[:, 4 * d:] + params["gk_b"][None, :]

    # scalar-per-head log decay: logsigmoid(gk) / gate_logit_normalizer
    glog = jax.nn.log_sigmoid(gk) / GATE_LOGIT_NORMALIZER        # (B*T, H)

    # TODO(synk): head split/merge still via XLA transposes (head_dim < 128).
    def to_heads(z, dh):
        return z.reshape(b, t, h, dh).transpose(0, 2, 1, 3).reshape(b * h, t, dh)

    qh, kh, vh = to_heads(q, dk), to_heads(k, dk), to_heads(v, dv)
    glh = glog.reshape(b, t, h).transpose(0, 2, 1).reshape(b * h, 1, t)

    o = gla_attention(qh, kh, vh, glh, scale=scale)              # (B*H, T, dv)
    o = o.reshape(b, h, t, dv).transpose(0, 2, 1, 3).reshape(b * t, d)

    # fused per-head RMSNorm + swish output gate (lane-dense on (B*T, D))
    o = gnorm_swish_gate(o, g, params["g_norm_w"], num_heads=h)
    o = linear(o, params["o_w"])                                 # o_proj

    # mlp_norm(hidden, residual, prenorm=True)
    normed, new_res = rmsnorm_residual(o, residual, params["mlp_norm_w"])

    # SwiGLU MLP (+ residual add fused into its epilogue)
    out = swiglu(normed, params["mlp_wg"], params["mlp_wu"], params["mlp_wd"], new_res)
    return out.reshape(b, t, d)


# --------------------------------------------------------------------------
# Pure-JAX reference (recurrent formulation) for correctness checking
# --------------------------------------------------------------------------
def ref_forward(x, params, *, num_heads):
    b, t, d = x.shape
    h = num_heads
    dk = dv = d // h
    scale = dk ** -0.5

    def rms(z, w):
        ms = jnp.mean(z * z, axis=-1, keepdims=True)
        return z * lax.rsqrt(ms + EPS) * w

    residual = x
    hn = rms(x, params["attn_norm_w"])
    q = hn @ params["q_w"]
    k = hn @ params["k_w"]
    v = hn @ params["v_w"]
    gk = hn @ params["gk_w"] + params["gk_b"]
    g = hn @ params["g_w"]

    qh = q.reshape(b, t, h, dk).transpose(0, 2, 1, 3)
    kh = k.reshape(b, t, h, dk).transpose(0, 2, 1, 3)
    vh = v.reshape(b, t, h, dv).transpose(0, 2, 1, 3)
    glog = (jax.nn.log_sigmoid(gk) / GATE_LOGIT_NORMALIZER).transpose(0, 2, 1)  # (b,h,t)

    def step(s, inp):
        qt, kt, vt, gt = inp
        s = s * jnp.exp(gt)[..., None, None] + kt[..., :, None] * vt[..., None, :]
        ot = jnp.einsum("bhk,bhkv->bhv", qt * scale, s)
        return s, ot

    s0 = jnp.zeros((b, h, dk, dv), jnp.float32)
    xs = (qh.transpose(2, 0, 1, 3), kh.transpose(2, 0, 1, 3),
          vh.transpose(2, 0, 1, 3), glog.transpose(2, 0, 1))
    _, o = lax.scan(step, s0, xs)
    o = o.transpose(1, 0, 2, 3)                                   # (b, t, h, dv)

    gq = g.reshape(b, t, h, dv)
    o = rms(o, params["g_norm_w"]) * (gq * jax.nn.sigmoid(gq))
    o = o.reshape(b, t, d) @ params["o_w"]

    new_res = o + residual
    normed = rms(new_res, params["mlp_norm_w"])
    a = normed @ params["mlp_wg"]
    u = normed @ params["mlp_wu"]
    m = (a * jax.nn.sigmoid(a) * u) @ params["mlp_wd"]
    return new_res + m


# --------------------------------------------------------------------------
# Deterministic parameter init
# --------------------------------------------------------------------------
def init_params(key, hidden, num_heads, mlp_inter):
    keys = jax.random.split(key, 10)
    dh = hidden // num_heads

    def w(k, shape):
        return (0.02 * jax.random.normal(k, shape)).astype(jnp.float32)

    return dict(
        attn_norm_w=jnp.ones((hidden,), jnp.float32),
        mlp_norm_w=jnp.ones((hidden,), jnp.float32),
        g_norm_w=jnp.ones((dh,), jnp.float32),
        q_w=w(keys[0], (hidden, hidden)),
        k_w=w(keys[1], (hidden, hidden)),
        v_w=w(keys[2], (hidden, hidden)),
        g_w=w(keys[3], (hidden, hidden)),
        gk_w=w(keys[4], (hidden, num_heads)),
        gk_b=w(keys[5], (num_heads,)),
        o_w=w(keys[6], (hidden, hidden)),
        mlp_wg=w(keys[7], (hidden, mlp_inter)),
        mlp_wu=w(keys[8], (hidden, mlp_inter)),
        mlp_wd=w(keys[9], (mlp_inter, hidden)),
    )


if __name__ == "__main__":
    B, T, HIDDEN, HEADS = 2, 8, 32, 4
    # TODO(synk): SwiGLU definition not included in the reference snippet; using the
    # standard down(silu(gate(x)) * up(x)) with intermediate = 2 * hidden_size.
    MLP_INTER = 2 * HIDDEN

    key = jax.random.PRNGKey(0)
    kx, kp = jax.random.split(key)
    x = jax.random.normal(kx, (B, T, HIDDEN), jnp.float32)
    params = init_params(kp, HIDDEN, HEADS, MLP_INTER)

    fwd = jax.jit(functools.partial(gla_block_forward, num_heads=HEADS))
    out = jax.block_until_ready(fwd(x, params))

    ref = ref_forward(x, params, num_heads=HEADS)
    # tolerance loosened vs the all-f32 version because MXU operands are now bf16
    np.testing.assert_allclose(np.asarray(out), np.asarray(ref), atol=1e-2, rtol=1e-2)
    print("KERNEL_OK")
</pallas_src>

<mosaic_0001>
module attributes {stable_mosaic.version = 11 : i64} {
  func.func @_rmsnorm_kernel(%arg0: i32, %arg1: memref<16x32xf32, #tpu.memory_space<vmem>>, %arg2: memref<1x32xf32, #tpu.memory_space<vmem>>, %arg3: memref<16x32xf32, #tpu.memory_space<vmem>>) attributes {dimension_semantics = [#tpu.dimension_semantics<parallel>], iteration_bounds = array<i64: 1>, scalar_prefetch = 0 : i64, scratch_operands = 0 : i64, tpu.core_type = #tpu.core_type<tc>, window_params = [{transform_indices = @transform_0, window_bounds = array<i64: 16, 32>}, {pipeline_mode = #tpu.pipeline_mode<synchronous>, transform_indices = @transform_1, window_bounds = array<i64: 1, 32>}, {transform_indices = @transform_2, window_bounds = array<i64: 16, 32>}]} {
    %c0 = arith.constant 0 : index
    %c0_0 = arith.constant 0 : index
    %0 = vector.load %arg1[%c0, %c0_0] : memref<16x32xf32, #tpu.memory_space<vmem>>, vector<16x32xf32>
    %1 = arith.mulf %0, %0 : vector<16x32xf32>
    %cst = arith.constant dense<0.000000e+00> : vector<16xf32>
    %2 = vector.multi_reduction <add>, %1, %cst [1] : vector<16x32xf32> to vector<16xf32>
    %3 = vector.shape_cast %2 : vector<16xf32> to vector<16x1xf32>
    %cst_1 = arith.constant 3.200000e+01 : f32
    %4 = vector.broadcast %cst_1 : f32 to vector<16x1xf32>
    %5 = arith.divf %3, %4 : vector<16x1xf32>
    %cst_2 = arith.constant 9.99999974E-6 : f32
    %6 = vector.broadcast %cst_2 : f32 to vector<16x1xf32>
    %7 = arith.addf %5, %6 : vector<16x1xf32>
    %8 = math.rsqrt %7 : vector<16x1xf32>
    %9 = vector.broadcast %8 : vector<16x1xf32> to vector<16x32xf32>
    %10 = arith.mulf %0, %9 : vector<16x32xf32>
    %c0_3 = arith.constant 0 : index
    %c0_4 = arith.constant 0 : index
    %11 = vector.load %arg2[%c0_3, %c0_4] : memref<1x32xf32, #tpu.memory_space<vmem>>, vector<1x32xf32>
    %12 = vector.broadcast %11 : vector<1x32xf32> to vector<16x32xf32>
    %13 = arith.mulf %10, %12 : vector<16x32xf32>
    %c0_5 = arith.constant 0 : index
    %c0_6 = arith.constant 0 : index
    %14 = vector.load %arg3[%c0_5, %c0_6] : memref<16x32xf32, #tpu.memory_space<vmem>>, vector<16x32xf32>
    tpu.vector_store %arg3[%c0_5, %c0_6], %13 {strides = array<i32>} : memref<16x32xf32, #tpu.memory_space<vmem>>, vector<16x32xf32>,
    return
  }
  func.func @transform_0(%arg0: i32) -> (i32, i32) {
    %c0_i32 = arith.constant 0 : i32
    %c0_i32_0 = arith.constant 0 : i32
    return %arg0, %c0_i32 : i32, i32
  }
  func.func @transform_1(%arg0: i32) -> (i32, i32) {
    %c0_i32 = arith.constant 0 : i32
    %c0_i32_0 = arith.constant 0 : i32
    %c0_i32_1 = arith.constant 0 : i32
    return %c0_i32, %c0_i32_0 : i32, i32
  }
  func.func @transform_2(%arg0: i32) -> (i32, i32) {
    %c0_i32 = arith.constant 0 : i32
    %c0_i32_0 = arith.constant 0 : i32
    return %arg0, %c0_i32 : i32, i32
  }
}

module attributes {stable_mosaic.version = 11 : i64} {
  func.func @_matmul_kernel(%arg0: i32, %arg1: i32, %arg2: i32, %arg3: memref<16x32xbf16, #tpu.memory_space<vmem>>, %arg4: memref<32x132xbf16, #tpu.memory_space<vmem>>, %arg5: memref<16x132xf32, #tpu.memory_space<vmem>>, %arg6: memref<16x132xf32, #tpu.memory_space<vmem>>) attributes {dimension_semantics = [#tpu.dimension_semantics<parallel>, #tpu.dimension_semantics<parallel>, #tpu.dimension_semantics<arbitrary>], iteration_bounds = array<i64: 1, 1, 1>, scalar_prefetch = 0 : i64, scratch_operands = 1 : i64, tpu.core_type = #tpu.core_type<tc>, window_params = [{transform_indices = @transform_0, window_bounds = array<i64: 16, 32>}, {transform_indices = @transform_1, window_bounds = array<i64: 32, 132>}, {transform_indices = @transform_2, window_bounds = array<i64: 16, 132>}]} {
    %c0_i32 = arith.constant 0 : i32
    %0 = arith.cmpi eq, %arg2, %c0_i32 : i32
    %1 = arith.extui %0 : i1 to i32
    %c0_i32_0 = arith.constant 0 : i32
    %2 = arith.cmpi ne, %1, %c0_i32_0 : i32
    scf.if %2 {
      %cst_10 = arith.constant 0.000000e+00 : f32
      %12 = vector.broadcast %cst_10 : f32 to vector<16x132xf32>
      %c0_11 = arith.constant 0 : index
      %c0_12 = arith.constant 0 : index
      %13 = vector.load %arg6[%c0_11, %c0_12] : memref<16x132xf32, #tpu.memory_space<vmem>>, vector<16x132xf32>
      tpu.vector_store %arg6[%c0_11, %c0_12], %12 {strides = array<i32>} : memref<16x132xf32, #tpu.memory_space<vmem>>, vector<16x132xf32>,
    } else {
    }
    %c0 = arith.constant 0 : index
    %c0_1 = arith.constant 0 : index
    %3 = vector.load %arg6[%c0, %c0_1] : memref<16x132xf32, #tpu.memory_space<vmem>>, vector<16x132xf32>
    %c0_2 = arith.constant 0 : index
    %c0_3 = arith.constant 0 : index
    %4 = vector.load %arg3[%c0_2, %c0_3] : memref<16x32xbf16, #tpu.memory_space<vmem>>, vector<16x32xbf16>
    %c0_4 = arith.constant 0 : index
    %c0_5 = arith.constant 0 : index
    %5 = vector.load %arg4[%c0_4, %c0_5] : memref<32x132xbf16, #tpu.memory_space<vmem>>, vector<32x132xbf16>
    %cst = arith.constant dense<0.000000e+00> : vector<16x132xf32>
    %6 = tpu.matmul %4, %5, %cst {dimension_numbers = #tpu.dot_dimension_numbers<[1], [0], [0], [1], [0, 0, 1, 1], [], []>} : vector<16x32xbf16>, vector<32x132xbf16>, vector<16x132xf32> -> vector<16x132xf32>
    %7 = arith.addf %3, %6 : vector<16x132xf32>
    %c0_6 = arith.constant 0 : index
    %c0_7 = arith.constant 0 : index
    %8 = vector.load %arg6[%c0_6, %c0_7] : memref<16x132xf32, #tpu.memory_space<vmem>>, vector<16x132xf32>
    tpu.vector_store %arg6[%c0_6, %c0_7], %7 {strides = array<i32>} : memref<16x132xf32, #tpu.memory_space<vmem>>, vector<16x132xf32>,
    %c0_i32_8 = arith.constant 0 : i32
    %9 = arith.cmpi eq, %arg2, %c0_i32_8 : i32
    %10 = arith.extui %9 : i1 to i32
    %c0_i32_9 = arith.constant 0 : i32
    %11 = arith.cmpi ne, %10, %c0_i32_9 : i32
    scf.if %11 {
      %c0_10 = arith.constant 0 : index
      %c0_11 = arith.constant 0 : index
      %12 = vector.load %arg6[%c0_10, %c0_11] : memref<16x132xf32, #tpu.memory_space<vmem>>, vector<16x132xf32>
      %c0_12 = arith.constant 0 : index
      %c0_13 = arith.constant 0 : index
      %13 = vector.load %arg5[%c0_12, %c0_13] : memref<16x132xf32, #tpu.memory_space<vmem>>, vector<16x132xf32>
      tpu.vector_store %arg5[%c0_12, %c0_13], %12 {strides = array<i32>} : memref<16x132xf32, #tpu.memory_space<vmem>>, vector<16x132xf32>,
    } else {
    }
    return
  }
  func.func @transform_0(%arg0: i32, %arg1: i32, %arg2: i32) -> (i32, i32) {
    %c0_i32 = arith.constant 0 : i32
    return %arg0, %arg2 : i32, i32
  }
  func.func @transform_1(%arg0: i32, %arg1: i32, %arg2: i32) -> (i32, i32) {
    %c0_i32 = arith.constant 0 : i32
    return %arg2, %arg1 : i32, i32
  }
  func.func @transform_2(%arg0: i32, %arg1: i32, %arg2: i32) -> (i32, i32) {
    %c0_i32 = arith.constant 0 : i32
    return %arg0, %arg1 : i32, i32
  }
}

module attributes {stable_mosaic.version = 11 : i64} {
  func.func @_gla_chunk_kernel(%arg0: i32, %arg1: i32, %arg2: memref<1x8x8xbf16, #tpu.memory_space<vmem>>, %arg3: memref<1x8x8xbf16, #tpu.memory_space<vmem>>, %arg4: memref<1x8x8xbf16, #tpu.memory_space<vmem>>, %arg5: memref<1x1x8xf32, #tpu.memory_space<vmem>>, %arg6: memref<1x8x8xf32, #tpu.memory_space<vmem>>, %arg7: memref<8x8xf32, #tpu.memory_space<vmem>>) attributes {dimension_semantics = [#tpu.dimension_semantics<parallel>, #tpu.dimension_semantics<arbitrary>], iteration_bounds = array<i64: 8, 1>, scalar_prefetch = 0 : i64, scratch_operands = 1 : i64, tpu.core_type = #tpu.core_type<tc>, window_params = [{transform_indices = @transform_0, window_bounds = array<i64: 1, 8, 8>}, {transform_indices = @transform_1, window_bounds = array<i64: 1, 8, 8>}, {transform_indices = @transform_2, window_bounds = array<i64: 1, 8, 8>}, {transform_indices = @transform_3, window_bounds = array<i64: 1, 1, 8>}, {transform_indices = @transform_4, window_bounds = array<i64: 1, 8, 8>}]} {
    %c0_i32 = arith.constant 0 : i32
    %0 = arith.cmpi eq, %arg1, %c0_i32 : i32
    %1 = arith.extui %0 : i1 to i32
    %c0_i32_0 = arith.constant 0 : i32
    %2 = arith.cmpi ne, %1, %c0_i32_0 : i32
    scf.if %2 {
      %cst_30 = arith.constant 0.000000e+00 : f32
      %62 = vector.broadcast %cst_30 : f32 to vector<8x8xf32>
      %c0_31 = arith.constant 0 : index
      %c0_32 = arith.constant 0 : index
      %63 = vector.load %arg7[%c0_31, %c0_32] : memref<8x8xf32, #tpu.memory_space<vmem>>, vector<8x8xf32>
      tpu.vector_store %arg7[%c0_31, %c0_32], %62 {strides = array<i32>} : memref<8x8xf32, #tpu.memory_space<vmem>>, vector<8x8xf32>,
    } else {
    }
    %c0 = arith.constant 0 : index
    %c0_1 = arith.constant 0 : index
    %c0_2 = arith.constant 0 : index
    %3 = vector.load %arg2[%c0, %c0_1, %c0_2] : memref<1x8x8xbf16, #tpu.memory_space<vmem>>, vector<1x8x8xbf16>
    %4 = vector.shape_cast %3 : vector<1x8x8xbf16> to vector<8x8xbf16>
    %c0_3 = arith.constant 0 : index
    %c0_4 = arith.constant 0 : index
    %c0_5 = arith.constant 0 : index
    %5 = vector.load %arg3[%c0_3, %c0_4, %c0_5] : memref<1x8x8xbf16, #tpu.memory_space<vmem>>, vector<1x8x8xbf16>
    %6 = vector.shape_cast %5 : vector<1x8x8xbf16> to vector<8x8xbf16>
    %c0_6 = arith.constant 0 : index
    %c0_7 = arith.constant 0 : index
    %c0_8 = arith.constant 0 : index
    %7 = vector.load %arg4[%c0_6, %c0_7, %c0_8] : memref<1x8x8xbf16, #tpu.memory_space<vmem>>, vector<1x8x8xbf16>
    %8 = vector.shape_cast %7 : vector<1x8x8xbf16> to vector<8x8xbf16>
    %c0_9 = arith.constant 0 : index
    %c0_10 = arith.constant 0 : index
    %c0_11 = arith.constant 0 : index
    %9 = vector.load %arg5[%c0_9, %c0_10, %c0_11] : memref<1x1x8xf32, #tpu.memory_space<vmem>>, vector<1x1x8xf32>
    %10 = vector.shape_cast %9 : vector<1x1x8xf32> to vector<1x8xf32>
    %11 = tpu.iota {dimensions = array<i32: 0>} : vector<8x8xi32>
    %12 = tpu.iota {dimensions = array<i32: 1>} : vector<8x8xi32>
    %13 = arith.cmpi sge, %11, %12 : vector<8x8xi32>
    %14 = arith.cmpi sle, %12, %11 : vector<8x8xi32>
    %15 = arith.extui %14 : vector<8x8xi1> to vector<8x8xi32>
    %16 = arith.sitofp %15 : vector<8x8xi32> to vector<8x8xf32>
    %17 = arith.cmpi sle, %11, %12 : vector<8x8xi32>
    %18 = arith.extui %17 : vector<8x8xi1> to vector<8x8xi32>
    %19 = arith.sitofp %18 : vector<8x8xi32> to vector<8x8xf32>
    %cst = arith.constant dense<0.000000e+00> : vector<8x1xf32>
    %20 = tpu.matmul %16, %10, %cst {dimension_numbers = #tpu.dot_dimension_numbers<[1], [1], [0], [0], [0, 0, 1, 0], [], []>} : vector<8x8xf32>, vector<1x8xf32>, vector<8x1xf32> -> vector<8x1xf32>
    %cst_12 = arith.constant dense<0.000000e+00> : vector<1x8xf32>
    %21 = tpu.matmul %10, %19, %cst_12 {dimension_numbers = #tpu.dot_dimension_numbers<[1], [0], [0], [1], [0, 0, 1, 1], [], []>} : vector<1x8xf32>, vector<8x8xf32>, vector<1x8xf32> -> vector<1x8xf32>
    %cst_13 = arith.constant dense<0.000000e+00> : vector<1xf32>
    %22 = vector.multi_reduction <add>, %10, %cst_13 [1] : vector<1x8xf32> to vector<1xf32>
    %23 = vector.shape_cast %22 : vector<1xf32> to vector<1x1xf32>
    %cst_14 = arith.constant dense<0.000000e+00> : vector<8x8xf32>
    %24 = tpu.matmul %4, %6, %cst_14 {dimension_numbers = #tpu.dot_dimension_numbers<[1], [1], [0], [0], [0, 0, 1, 0], [], []>} : vector<8x8xbf16>, vector<8x8xbf16>, vector<8x8xf32> -> vector<8x8xf32>
    %25 = vector.broadcast %20 : vector<8x1xf32> to vector<8x8xf32>
    %26 = vector.broadcast %21 : vector<1x8xf32> to vector<8x8xf32>
    %27 = arith.subf %25, %26 : vector<8x8xf32>
    %cst_15 = arith.constant 0xFF800000 : f32
    %28 = vector.broadcast %cst_15 : f32 to vector<8x8xf32>
    %29 = arith.select %13, %27, %28 : vector<8x8xi1>, vector<8x8xf32>
    %30 = math.exp %29 : vector<8x8xf32>
    %31 = arith.mulf %24, %30 : vector<8x8xf32>
    %cst_16 = arith.constant 0.353553385 : f32
    %32 = vector.broadcast %cst_16 : f32 to vector<8x8xf32>
    %33 = arith.mulf %31, %32 : vector<8x8xf32>
    %34 = arith.truncf %33 : vector<8x8xf32> to vector<8x8xbf16>
    %cst_17 = arith.constant dense<0.000000e+00> : vector<8x8xf32>
    %35 = tpu.matmul %34, %8, %cst_17 {dimension_numbers = #tpu.dot_dimension_numbers<[1], [0], [0], [1], [0, 0, 1, 1], [], []>} : vector<8x8xbf16>, vector<8x8xbf16>, vector<8x8xf32> -> vector<8x8xf32>
    %36 = arith.extf %4 : vector<8x8xbf16> to vector<8x8xf32>
    %37 = math.exp %20 : vector<8x1xf32>
    %cst_18 = arith.constant 0.353553385 : f32
    %38 = vector.broadcast %cst_18 : f32 to vector<8x1xf32>
    %39 = arith.mulf %38, %37 : vector<8x1xf32>
    %40 = vector.broadcast %39 : vector<8x1xf32> to vector<8x8xf32>
    %41 = arith.mulf %36, %40 : vector<8x8xf32>
    %c0_19 = arith.constant 0 : index
    %c0_20 = arith.constant 0 : index
    %42 = vector.load %arg7[%c0_19, %c0_20] : memref<8x8xf32, #tpu.memory_space<vmem>>, vector<8x8xf32>
    %cst_21 = arith.constant dense<0.000000e+00> : vector<8x8xf32>
    %43 = tpu.matmul %41, %42, %cst_21 {dimension_numbers = #tpu.dot_dimension_numbers<[1], [0], [0], [1], [0, 0, 1, 1], [], []>} : vector<8x8xf32>, vector<8x8xf32>, vector<8x8xf32> -> vector<8x8xf32>
    %44 = arith.addf %35, %43 : vector<8x8xf32>
    %c0_22 = arith.constant 0 : index
    %c0_23 = arith.constant 0 : index
    %c0_24 = arith.constant 0 : index
    %45 = vector.load %arg6[%c0_22, %c0_23, %c0_24] : memref<1x8x8xf32, #tpu.memory_space<vmem>>, vector<1x8x8xf32>
    %46 = vector.shape_cast %45 : vector<1x8x8xf32> to vector<8x8xf32>
    %47 = vector.shape_cast %44 : vector<8x8xf32> to vector<1x8x8xf32>
    tpu.vector_store %arg6[%c0_22, %c0_23, %c0_24], %47 {strides = array<i32>} : memref<1x8x8xf32, #tpu.memory_space<vmem>>, vector<1x8x8xf32>,
    %48 = arith.extf %6 : vector<8x8xbf16> to vector<8x8xf32>
    %49 = vector.broadcast %23 : vector<1x1xf32> to vector<8x1xf32>
    %50 = arith.subf %49, %20 : vector<8x1xf32>
    %51 = math.exp %50 : vector<8x1xf32>
    %52 = vector.broadcast %51 : vector<8x1xf32> to vector<8x8xf32>
    %53 = arith.mulf %48, %52 : vector<8x8xf32>
    %54 = arith.truncf %53 : vector<8x8xf32> to vector<8x8xbf16>
    %cst_25 = arith.constant dense<0.000000e+00> : vector<8x8xf32>
    %55 = tpu.matmul %54, %8, %cst_25 {dimension_numbers = #tpu.dot_dimension_numbers<[0], [0], [1], [1], [0, 1, 1, 1], [], []>} : vector<8x8xbf16>, vector<8x8xbf16>, vector<8x8xf32> -> vector<8x8xf32>
    %c0_26 = arith.constant 0 : index
    %c0_27 = arith.constant 0 : index
    %56 = vector.load %arg7[%c0_26, %c0_27] : memref<8x8xf32, #tpu.memory_space<vmem>>, vector<8x8xf32>
    %57 = math.exp %23 : vector<1x1xf32>
    %58 = vector.broadcast %57 : vector<1x1xf32> to vector<8x8xf32>
    %59 = arith.mulf %56, %58 : vector<8x8xf32>
    %60 = arith.addf %59, %55 : vector<8x8xf32>
    %c0_28 = arith.constant 0 : index
    %c0_29 = arith.constant 0 : index
    %61 = vector.load %arg7[%c0_28, %c0_29] : memref<8x8xf32, #tpu.memory_space<vmem>>, vector<8x8xf32>
    tpu.vector_store %arg7[%c0_28, %c0_29], %60 {strides = array<i32>} : memref<8x8xf32, #tpu.memory_space<vmem>>, vector<8x8xf32>,
    return
  }
  func.func @transform_0(%arg0: i32, %arg1: i32) -> (i32, i32, i32) {
    %c0_i32 = arith.constant 0 : i32
    %c0_i32_0 = arith.constant 0 : i32
    return %arg0, %arg1, %c0_i32 : i32, i32, i32
  }
  func.func @transform_1(%arg0: i32, %arg1: i32) -> (i32, i32, i32) {
    %c0_i32 = arith.constant 0 : i32
    %c0_i32_0 = arith.constant 0 : i32
    return %arg0, %arg1, %c0_i32 : i32, i32, i32
  }
  func.func @transform_2(%arg0: i32, %arg1: i32) -> (i32, i32, i32) {
    %c0_i32 = arith.constant 0 : i32
    %c0_i32_0 = arith.constant 0 : i32
    return %arg0, %arg1, %c0_i32 : i32, i32, i32
  }
  func.func @transform_3(%arg0: i32, %arg1: i32) -> (i32, i32, i32) {
    %c0_i32 = arith.constant 0 : i32
    %c0_i32_0 = arith.constant 0 : i32
    return %arg0, %c0_i32, %arg1 : i32, i32, i32
  }
  func.func @transform_4(%arg0: i32, %arg1: i32) -> (i32, i32, i32) {
    %c0_i32 = arith.constant 0 : i32
    %c0_i32_0 = arith.constant 0 : i32
    return %arg0, %arg1, %c0_i32 : i32, i32, i32
  }
}

module attributes {stable_mosaic.version = 11 : i64} {
  func.func @_gnorm_swish_gate_kernel(%arg0: i32, %arg1: memref<16x32xf32, #tpu.memory_space<vmem>>, %arg2: memref<16x32xf32, #tpu.memory_space<vmem>>, %arg3: memref<1x32xf32, #tpu.memory_space<vmem>>, %arg4: memref<32x4xf32, #tpu.memory_space<vmem>>, %arg5: memref<16x32xf32, #tpu.memory_space<vmem>>) attributes {dimension_semantics = [#tpu.dimension_semantics<parallel>], iteration_bounds = array<i64: 1>, scalar_prefetch = 0 : i64, scratch_operands = 0 : i64, tpu.core_type = #tpu.core_type<tc>, window_params = [{transform_indices = @transform_0, window_bounds = array<i64: 16, 32>}, {transform_indices = @transform_1, window_bounds = array<i64: 16, 32>}, {pipeline_mode = #tpu.pipeline_mode<synchronous>, transform_indices = @transform_2, window_bounds = array<i64: 1, 32>}, {pipeline_mode = #tpu.pipeline_mode<synchronous>, transform_indices = @transform_3, window_bounds = array<i64: 32, 4>}, {transform_indices = @transform_4, window_bounds = array<i64: 16, 32>}]} {
    %c0 = arith.constant 0 : index
    %c0_0 = arith.constant 0 : index
    %0 = vector.load %arg1[%c0, %c0_0] : memref<16x32xf32, #tpu.memory_space<vmem>>, vector<16x32xf32>
    %c0_1 = arith.constant 0 : index
    %c0_2 = arith.constant 0 : index
    %1 = vector.load %arg2[%c0_1, %c0_2] : memref<16x32xf32, #tpu.memory_space<vmem>>, vector<16x32xf32>
    %c0_3 = arith.constant 0 : index
    %c0_4 = arith.constant 0 : index
    %2 = vector.load %arg4[%c0_3, %c0_4] : memref<32x4xf32, #tpu.memory_space<vmem>>, vector<32x4xf32>
    %3 = arith.mulf %0, %0 : vector<16x32xf32>
    %cst = arith.constant dense<0.000000e+00> : vector<16x4xf32>
    %4 = tpu.matmul %3, %2, %cst {dimension_numbers = #tpu.dot_dimension_numbers<[1], [0], [0], [1], [0, 0, 1, 1], [], []>} : vector<16x32xf32>, vector<32x4xf32>, vector<16x4xf32> -> vector<16x4xf32>
    %cst_5 = arith.constant 1.250000e-01 : f32
    %5 = vector.broadcast %cst_5 : f32 to vector<16x4xf32>
    %6 = arith.mulf %4, %5 : vector<16x4xf32>
    %cst_6 = arith.constant 9.99999974E-6 : f32
    %7 = vector.broadcast %cst_6 : f32 to vector<16x4xf32>
    %8 = arith.addf %6, %7 : vector<16x4xf32>
    %9 = math.rsqrt %8 : vector<16x4xf32>
    %cst_7 = arith.constant dense<0.000000e+00> : vector<16x32xf32>
    %10 = tpu.matmul %9, %2, %cst_7 {dimension_numbers = #tpu.dot_dimension_numbers<[1], [1], [0], [0], [0, 0, 1, 0], [], []>} : vector<16x4xf32>, vector<32x4xf32>, vector<16x32xf32> -> vector<16x32xf32>
    %11 = arith.mulf %0, %10 : vector<16x32xf32>
    %c0_8 = arith.constant 0 : index
    %c0_9 = arith.constant 0 : index
    %12 = vector.load %arg3[%c0_8, %c0_9] : memref<1x32xf32, #tpu.memory_space<vmem>>, vector<1x32xf32>
    %13 = vector.broadcast %12 : vector<1x32xf32> to vector<16x32xf32>
    %14 = arith.mulf %11, %13 : vector<16x32xf32>
    %15 = arith.negf %1 : vector<16x32xf32>
    %16 = math.exp %15 : vector<16x32xf32>
    %cst_10 = arith.constant 1.000000e+00 : f32
    %17 = vector.broadcast %cst_10 : f32 to vector<16x32xf32>
    %18 = arith.addf %17, %16 : vector<16x32xf32>
    %19 = arith.divf %17, %18 : vector<16x32xf32>
    %20 = arith.mulf %1, %19 : vector<16x32xf32>
    %21 = arith.mulf %14, %20 : vector<16x32xf32>
    %c0_11 = arith.constant 0 : index
    %c0_12 = arith.constant 0 : index
    %22 = vector.load %arg5[%c0_11, %c0_12] : memref<16x32xf32, #tpu.memory_space<vmem>>, vector<16x32xf32>
    tpu.vector_store %arg5[%c0_11, %c0_12], %21 {strides = array<i32>} : memref<16x32xf32, #tpu.memory_space<vmem>>, vector<16x32xf32>,
    return
  }
  func.func @transform_0(%arg0: i32) -> (i32, i32) {
    %c0_i32 = arith.constant 0 : i32
    %c0_i32_0 = arith.constant 0 : i32
    return %arg0, %c0_i32 : i32, i32
  }
  func.func @transform_1(%arg0: i32) -> (i32, i32) {
    %c0_i32 = arith.constant 0 : i32
    %c0_i32_0 = arith.constant 0 : i32
    return %arg0, %c0_i32 : i32, i32
  }
  func.func @transform_2(%arg0: i32) -> (i32, i32) {
    %c0_i32 = arith.constant 0 : i32
    %c0_i32_0 = arith.constant 0 : i32
    %c0_i32_1 = arith.constant 0 : i32
    return %c0_i32, %c0_i32_0 : i32, i32
  }
  func.func @transform_3(%arg0: i32) -> (i32, i32) {
    %c0_i32 = arith.constant 0 : i32
    %c0_i32_0 = arith.constant 0 : i32
    %c0_i32_1 = arith.constant 0 : i32
    return %c0_i32, %c0_i32_0 : i32, i32
  }
  func.func @transform_4(%arg0: i32) -> (i32, i32) {
    %c0_i32 = arith.constant 0 : i32
    %c0_i32_0 = arith.constant 0 : i32
    return %arg0, %c0_i32 : i32, i32
  }
}

module attributes {stable_mosaic.version = 11 : i64} {
  func.func @_rmsnorm_residual_kernel(%arg0: i32, %arg1: memref<16x32xf32, #tpu.memory_space<vmem>>, %arg2: memref<16x32xf32, #tpu.memory_space<vmem>>, %arg3: memref<1x32xf32, #tpu.memory_space<vmem>>, %arg4: memref<16x32xf32, #tpu.memory_space<vmem>>, %arg5: memref<16x32xf32, #tpu.memory_space<vmem>>) attributes {dimension_semantics = [#tpu.dimension_semantics<parallel>], iteration_bounds = array<i64: 1>, scalar_prefetch = 0 : i64, scratch_operands = 0 : i64, tpu.core_type = #tpu.core_type<tc>, window_params = [{transform_indices = @transform_0, window_bounds = array<i64: 16, 32>}, {transform_indices = @transform_1, window_bounds = array<i64: 16, 32>}, {pipeline_mode = #tpu.pipeline_mode<synchronous>, transform_indices = @transform_2, window_bounds = array<i64: 1, 32>}, {transform_indices = @transform_3, window_bounds = array<i64: 16, 32>}, {transform_indices = @transform_4, window_bounds = array<i64: 16, 32>}]} {
    %c0 = arith.constant 0 : index
    %c0_0 = arith.constant 0 : index
    %0 = vector.load %arg1[%c0, %c0_0] : memref<16x32xf32, #tpu.memory_space<vmem>>, vector<16x32xf32>
    %c0_1 = arith.constant 0 : index
    %c0_2 = arith.constant 0 : index
    %1 = vector.load %arg2[%c0_1, %c0_2] : memref<16x32xf32, #tpu.memory_space<vmem>>, vector<16x32xf32>
    %2 = arith.addf %0, %1 : vector<16x32xf32>
    %c0_3 = arith.constant 0 : index
    %c0_4 = arith.constant 0 : index
    %3 = vector.load %arg5[%c0_3, %c0_4] : memref<16x32xf32, #tpu.memory_space<vmem>>, vector<16x32xf32>
    tpu.vector_store %arg5[%c0_3, %c0_4], %2 {strides = array<i32>} : memref<16x32xf32, #tpu.memory_space<vmem>>, vector<16x32xf32>,
    %4 = arith.mulf %2, %2 : vector<16x32xf32>
    %cst = arith.constant dense<0.000000e+00> : vector<16xf32>
    %5 = vector.multi_reduction <add>, %4, %cst [1] : vector<16x32xf32> to vector<16xf32>
    %6 = vector.shape_cast %5 : vector<16xf32> to vector<16x1xf32>
    %cst_5 = arith.constant 3.200000e+01 : f32
    %7 = vector.broadcast %cst_5 : f32 to vector<16x1xf32>
    %8 = arith.divf %6, %7 : vector<16x1xf32>
    %cst_6 = arith.constant 9.99999974E-6 : f32
    %9 = vector.broadcast %cst_6 : f32 to vector<16x1xf32>
    %10 = arith.addf %8, %9 : vector<16x1xf32>
    %11 = math.rsqrt %10 : vector<16x1xf32>
    %12 = vector.broadcast %11 : vector<16x1xf32> to vector<16x32xf32>
    %13 = arith.mulf %2, %12 : vector<16x32xf32>
    %c0_7 = arith.constant 0 : index
    %c0_8 = arith.constant 0 : index
    %14 = vector.load %arg3[%c0_7, %c0_8] : memref<1x32xf32, #tpu.memory_space<vmem>>, vector<1x32xf32>
    %15 = vector.broadcast %14 : vector<1x32xf32> to vector<16x32xf32>
    %16 = arith.mulf %13, %15 : vector<16x32xf32>
    %c0_9 = arith.constant 0 : index
    %c0_10 = arith.constant 0 : index
    %17 = vector.load %arg4[%c0_9, %c0_10] : memref<16x32xf32, #tpu.memory_space<vmem>>, vector<16x32xf32>
    tpu.vector_store %arg4[%c0_9, %c0_10], %16 {strides = array<i32>} : memref<16x32xf32, #tpu.memory_space<vmem>>, vector<16x32xf32>,
    return
  }
  func.func @transform_0(%arg0: i32) -> (i32, i32) {
    %c0_i32 = arith.constant 0 : i32
    %c0_i32_0 = arith.constant 0 : i32
    return %arg0, %c0_i32 : i32, i32
  }
  func.func @transform_1(%arg0: i32) -> (i32, i32) {
    %c0_i32 = arith.constant 0 : i32
    %c0_i32_0 = arith.constant 0 : i32
    return %arg0, %c0_i32 : i32, i32
  }
  func.func @transform_2(%arg0: i32) -> (i32, i32) {
    %c0_i32 = arith.constant 0 : i32
    %c0_i32_0 = arith.constant 0 : i32
    %c0_i32_1 = arith.constant 0 : i32
    return %c0_i32, %c0_i32_0 : i32, i32
  }
  func.func @transform_3(%arg0: i32) -> (i32, i32) {
    %c0_i32 = arith.constant 0 : i32
    %c0_i32_0 = arith.constant 0 : i32
    return %arg0, %c0_i32 : i32, i32
  }
  func.func @transform_4(%arg0: i32) -> (i32, i32) {
    %c0_i32 = arith.constant 0 : i32
    %c0_i32_0 = arith.constant 0 : i32
    return %arg0, %c0_i32 : i32, i32
  }
}

module attributes {stable_mosaic.version = 11 : i64} {
  func.func @_matmul_kernel(%arg0: i32, %arg1: i32, %arg2: i32, %arg3: memref<16x32xbf16, #tpu.memory_space<vmem>>, %arg4: memref<32x32xbf16, #tpu.memory_space<vmem>>, %arg5: memref<16x32xf32, #tpu.memory_space<vmem>>, %arg6: memref<16x32xf32, #tpu.memory_space<vmem>>) attributes {dimension_semantics = [#tpu.dimension_semantics<parallel>, #tpu.dimension_semantics<parallel>, #tpu.dimension_semantics<arbitrary>], iteration_bounds = array<i64: 1, 1, 1>, scalar_prefetch = 0 : i64, scratch_operands = 1 : i64, tpu.core_type = #tpu.core_type<tc>, window_params = [{transform_indices = @transform_0, window_bounds = array<i64: 16, 32>}, {transform_indices = @transform_1, window_bounds = array<i64: 32, 32>}, {transform_indices = @transform_2, window_bounds = array<i64: 16, 32>}]} {
    %c0_i32 = arith.constant 0 : i32
    %0 = arith.cmpi eq, %arg2, %c0_i32 : i32
    %1 = arith.extui %0 : i1 to i32
    %c0_i32_0 = arith.constant 0 : i32
    %2 = arith.cmpi ne, %1, %c0_i32_0 : i32
    scf.if %2 {
      %cst_10 = arith.constant 0.000000e+00 : f32
      %12 = vector.broadcast %cst_10 : f32 to vector<16x32xf32>
      %c0_11 = arith.constant 0 : index
      %c0_12 = arith.constant 0 : index
      %13 = vector.load %arg6[%c0_11, %c0_12] : memref<16x32xf32, #tpu.memory_space<vmem>>, vector<16x32xf32>
      tpu.vector_store %arg6[%c0_11, %c0_12], %12 {strides = array<i32>} : memref<16x32xf32, #tpu.memory_space<vmem>>, vector<16x32xf32>,
    } else {
    }
    %c0 = arith.constant 0 : index
    %c0_1 = arith.constant 0 : index
    %3 = vector.load %arg6[%c0, %c0_1] : memref<16x32xf32, #tpu.memory_space<vmem>>, vector<16x32xf32>
    %c0_2 = arith.constant 0 : index
    %c0_3 = arith.constant 0 : index
    %4 = vector.load %arg3[%c0_2, %c0_3] : memref<16x32xbf16, #tpu.memory_space<vmem>>, vector<16x32xbf16>
    %c0_4 = arith.constant 0 : index
    %c0_5 = arith.constant 0 : index
    %5 = vector.load %arg4[%c0_4, %c0_5] : memref<32x32xbf16, #tpu.memory_space<vmem>>, vector<32x32xbf16>
    %cst = arith.constant dense<0.000000e+00> : vector<16x32xf32>
    %6 = tpu.matmul %4, %5, %cst {dimension_numbers = #tpu.dot_dimension_numbers<[1], [0], [0], [1], [0, 0, 1, 1], [], []>} : vector<16x32xbf16>, vector<32x32xbf16>, vector<16x32xf32> -> vector<16x32xf32>
    %7 = arith.addf %3, %6 : vector<16x32xf32>
    %c0_6 = arith.constant 0 : index
    %c0_7 = arith.constant 0 : index
    %8 = vector.load %arg6[%c0_6, %c0_7] : memref<16x32xf32, #tpu.memory_space<vmem>>, vector<16x32xf32>
    tpu.vector_store %arg6[%c0_6, %c0_7], %7 {strides = array<i32>} : memref<16x32xf32, #tpu.memory_space<vmem>>, vector<16x32xf32>,
    %c0_i32_8 = arith.constant 0 : i32
    %9 = arith.cmpi eq, %arg2, %c0_i32_8 : i32
    %10 = arith.extui %9 : i1 to i32
    %c0_i32_9 = arith.constant 0 : i32
    %11 = arith.cmpi ne, %10, %c0_i32_9 : i32
    scf.if %11 {
      %c0_10 = arith.constant 0 : index
      %c0_11 = arith.constant 0 : index
      %12 = vector.load %arg6[%c0_10, %c0_11] : memref<16x32xf32, #tpu.memory_space<vmem>>, vector<16x32xf32>
      %c0_12 = arith.constant 0 : index
      %c0_13 = arith.constant 0 : index
      %13 = vector.load %arg5[%c0_12, %c0_13] : memref<16x32xf32, #tpu.memory_space<vmem>>, vector<16x32xf32>
      tpu.vector_store %arg5[%c0_12, %c0_13], %12 {strides = array<i32>} : memref<16x32xf32, #tpu.memory_space<vmem>>, vector<16x32xf32>,
    } else {
    }
    return
  }
  func.func @transform_0(%arg0: i32, %arg1: i32, %arg2: i32) -> (i32, i32) {
    %c0_i32 = arith.constant 0 : i32
    return %arg0, %arg2 : i32, i32
  }
  func.func @transform_1(%arg0: i32, %arg1: i32, %arg2: i32) -> (i32, i32) {
    %c0_i32 = arith.constant 0 : i32
    return %arg2, %arg1 : i32, i32
  }
  func.func @transform_2(%arg0: i32, %arg1: i32, %arg2: i32) -> (i32, i32) {
    %c0_i32 = arith.constant 0 : i32
    return %arg0, %arg1 : i32, i32
  }
}

module attributes {stable_mosaic.version = 11 : i64} {
  func.func @_swiglu_kernel(%arg0: i32, %arg1: i32, %arg2: memref<16x32xbf16, #tpu.memory_space<vmem>>, %arg3: memref<32x64xbf16, #tpu.memory_space<vmem>>, %arg4: memref<32x64xbf16, #tpu.memory_space<vmem>>, %arg5: memref<64x32xbf16, #tpu.memory_space<vmem>>, %arg6: memref<16x32xf32, #tpu.memory_space<vmem>>, %arg7: memref<16x32xf32, #tpu.memory_space<vmem>>, %arg8: memref<16x32xf32, #tpu.memory_space<vmem>>) attributes {dimension_semantics = [#tpu.dimension_semantics<parallel>, #tpu.dimension_semantics<arbitrary>], iteration_bounds = array<i64: 1, 1>, scalar_prefetch = 0 : i64, scratch_operands = 1 : i64, tpu.core_type = #tpu.core_type<tc>, window_params = [{transform_indices = @transform_0, window_bounds = array<i64: 16, 32>}, {transform_indices = @transform_1, window_bounds = array<i64: 32, 64>}, {transform_indices = @transform_2, window_bounds = array<i64: 32, 64>}, {transform_indices = @transform_3, window_bounds = array<i64: 64, 32>}, {transform_indices = @transform_4, window_bounds = array<i64: 16, 32>}, {transform_indices = @transform_5, window_bounds = array<i64: 16, 32>}]} {
    %c0_i32 = arith.constant 0 : i32
    %0 = arith.cmpi eq, %arg1, %c0_i32 : i32
    %1 = arith.extui %0 : i1 to i32
    %c0_i32_0 = arith.constant 0 : i32
    %2 = arith.cmpi ne, %1, %c0_i32_0 : i32
    scf.if %2 {
      %cst_17 = arith.constant 0.000000e+00 : f32
      %24 = vector.broadcast %cst_17 : f32 to vector<16x32xf32>
      %c0_18 = arith.constant 0 : index
      %c0_19 = arith.constant 0 : index
      %25 = vector.load %arg8[%c0_18, %c0_19] : memref<16x32xf32, #tpu.memory_space<vmem>>, vector<16x32xf32>
      tpu.vector_store %arg8[%c0_18, %c0_19], %24 {strides = array<i32>} : memref<16x32xf32, #tpu.memory_space<vmem>>, vector<16x32xf32>,
    } else {
    }
    %c0 = arith.constant 0 : index
    %c0_1 = arith.constant 0 : index
    %3 = vector.load %arg2[%c0, %c0_1] : memref<16x32xbf16, #tpu.memory_space<vmem>>, vector<16x32xbf16>
    %c0_2 = arith.constant 0 : index
    %c0_3 = arith.constant 0 : index
    %4 = vector.load %arg3[%c0_2, %c0_3] : memref<32x64xbf16, #tpu.memory_space<vmem>>, vector<32x64xbf16>
    %cst = arith.constant dense<0.000000e+00> : vector<16x64xf32>
    %5 = tpu.matmul %3, %4, %cst {dimension_numbers = #tpu.dot_dimension_numbers<[1], [0], [0], [1], [0, 0, 1, 1], [], []>} : vector<16x32xbf16>, vector<32x64xbf16>, vector<16x64xf32> -> vector<16x64xf32>
    %c0_4 = arith.constant 0 : index
    %c0_5 = arith.constant 0 : index
    %6 = vector.load %arg4[%c0_4, %c0_5] : memref<32x64xbf16, #tpu.memory_space<vmem>>, vector<32x64xbf16>
    %cst_6 = arith.constant dense<0.000000e+00> : vector<16x64xf32>
    %7 = tpu.matmul %3, %6, %cst_6 {dimension_numbers = #tpu.dot_dimension_numbers<[1], [0], [0], [1], [0, 0, 1, 1], [], []>} : vector<16x32xbf16>, vector<32x64xbf16>, vector<16x64xf32> -> vector<16x64xf32>
    %8 = arith.negf %5 : vector<16x64xf32>
    %9 = math.exp %8 : vector<16x64xf32>
    %cst_7 = arith.constant 1.000000e+00 : f32
    %10 = vector.broadcast %cst_7 : f32 to vector<16x64xf32>
    %11 = arith.addf %10, %9 : vector<16x64xf32>
    %12 = arith.divf %10, %11 : vector<16x64xf32>
    %13 = arith.mulf %5, %12 : vector<16x64xf32>
    %14 = arith.mulf %13, %7 : vector<16x64xf32>
    %15 = arith.truncf %14 : vector<16x64xf32> to vector<16x64xbf16>
    %c0_8 = arith.constant 0 : index
    %c0_9 = arith.constant 0 : index
    %16 = vector.load %arg8[%c0_8, %c0_9] : memref<16x32xf32, #tpu.memory_space<vmem>>, vector<16x32xf32>
    %c0_10 = arith.constant 0 : index
    %c0_11 = arith.constant 0 : index
    %17 = vector.load %arg5[%c0_10, %c0_11] : memref<64x32xbf16, #tpu.memory_space<vmem>>, vector<64x32xbf16>
    %cst_12 = arith.constant dense<0.000000e+00> : vector<16x32xf32>
    %18 = tpu.matmul %15, %17, %cst_12 {dimension_numbers = #tpu.dot_dimension_numbers<[1], [0], [0], [1], [0, 0, 1, 1], [], []>} : vector<16x64xbf16>, vector<64x32xbf16>, vector<16x32xf32> -> vector<16x32xf32>
    %19 = arith.addf %16, %18 : vector<16x32xf32>
    %c0_13 = arith.constant 0 : index
    %c0_14 = arith.constant 0 : index
    %20 = vector.load %arg8[%c0_13, %c0_14] : memref<16x32xf32, #tpu.memory_space<vmem>>, vector<16x32xf32>
    tpu.vector_store %arg8[%c0_13, %c0_14], %19 {strides = array<i32>} : memref<16x32xf32, #tpu.memory_space<vmem>>, vector<16x32xf32>,
    %c0_i32_15 = arith.constant 0 : i32
    %21 = arith.cmpi eq, %arg1, %c0_i32_15 : i32
    %22 = arith.extui %21 : i1 to i32
    %c0_i32_16 = arith.constant 0 : i32
    %23 = arith.cmpi ne, %22, %c0_i32_16 : i32
    scf.if %23 {
      %c0_17 = arith.constant 0 : index
      %c0_18 = arith.constant 0 : index
      %24 = vector.load %arg8[%c0_17, %c0_18] : memref<16x32xf32, #tpu.memory_space<vmem>>, vector<16x32xf32>
      %c0_19 = arith.constant 0 : index
      %c0_20 = arith.constant 0 : index
      %25 = vector.load %arg6[%c0_19, %c0_20] : memref<16x32xf32, #tpu.memory_space<vmem>>, vector<16x32xf32>
      %26 = arith.addf %24, %25 : vector<16x32xf32>
      %c0_21 = arith.constant 0 : index
      %c0_22 = arith.constant 0 : index
      %27 = vector.load %arg7[%c0_21, %c0_22] : memref<16x32xf32, #tpu.memory_space<vmem>>, vector<16x32xf32>
      tpu.vector_store %arg7[%c0_21, %c0_22], %26 {strides = array<i32>} : memref<16x32xf32, #tpu.memory_space<vmem>>, vector<16x32xf32>,
    } else {
    }
    return
  }
  func.func @transform_0(%arg0: i32, %arg1: i32) -> (i32, i32) {
    %c0_i32 = arith.constant 0 : i32
    %c0_i32_0 = arith.constant 0 : i32
    return %arg0, %c0_i32 : i32, i32
  }
  func.func @transform_1(%arg0: i32, %arg1: i32) -> (i32, i32) {
    %c0_i32 = arith.constant 0 : i32
    %c0_i32_0 = arith.constant 0 : i32
    return %c0_i32, %arg1 : i32, i32
  }
  func.func @transform_2(%arg0: i32, %arg1: i32) -> (i32, i32) {
    %c0_i32 = arith.constant 0 : i32
    %c0_i32_0 = arith.constant 0 : i32
    return %c0_i32, %arg1 : i32, i32
  }
  func.func @transform_3(%arg0: i32, %arg1: i32) -> (i32, i32) {
    %c0_i32 = arith.constant 0 : i32
    %c0_i32_0 = arith.constant 0 : i32
    return %arg1, %c0_i32 : i32, i32
  }
  func.func @transform_4(%arg0: i32, %arg1: i32) -> (i32, i32) {
    %c0_i32 = arith.constant 0 : i32
    %c0_i32_0 = arith.constant 0 : i32
    return %arg0, %c0_i32 : i32, i32
  }
  func.func @transform_5(%arg0: i32, %arg1: i32) -> (i32, i32) {
    %c0_i32 = arith.constant 0 : i32
    %c0_i32_0 = arith.constant 0 : i32
    return %arg0, %c0_i32 : i32, i32
  }
}

</mosaic_0001>

<bundles_post_ra>
// kernel: tile.8
= control target key start
LH: loop header
LB: loop body
LE: loop exit
PB: predicated region body
PF: predicated region fallthrough
CT: control target
= control target key end

     0   :  { %s22_s0 = inlined_call_operand.vmem [shape: f32[8], index: 0, kind: input, shape index: {}]   ;;  %s23_s1 = inlined_call_operand.vmem [shape: f32[4,8], index: 1, kind: output, shape index: {}]  }
   0x1   :  { %v4_v0 = vld [vmem:[%s22_s0] ss:$0 sm:$0xff] }
   0x2   :  { %5 = vst [vmem:[%s23_s1] sm:$0xf] %v4_v0 }

// kernel: tile.9
= control target key start
LH: loop header
LB: loop body
LE: loop exit
PB: predicated region body
PF: predicated region fallthrough
CT: control target
= control target key end

     0   :  { %vm8_vm0 = vcmask 64512   ;;  %s40_s8 = smov 8   ;;  %s41_s9 = smov 16   ;;  %vm14_vm1 = vcmask 261312   ;;  %vm20_vm2 = vcmask 195712   ;;  %vm26_vm3 = vcmask 130112   ;;  %s58_s0 = inlined_call_operand.vmem [shape: f32[4,8], index: 0, kind: input, shape index: {}]   ;;  %s59_s1 = inlined_call_operand.vmem [shape: f32[1,32], index: 1, kind: output, shape index: {}]  }
   0x1   :  { %v5_v0 = vld [vmem:[%s58_s0] sm:$0xf]  ;;  %s39_s0 = smov 24  }
   0x2   :  { %6 = vst [vmem:[#allocation1] sm:$0xf] %v5_v0 }
   0x9   :  { %v11_v1 = vld [vmem:[#allocation1 + $0x3] sm:$0x1]   ;;  %v23_v2 = vld [vmem:[#allocation1 + $0x1] sm:$0x1]   ;;  %v7_v3 = vld [vmem:[#allocation1] sm:$0x1]  }
   0xa   :  { %12 = vrot.lane.b32.xlu0 %v11_v1, %s39_s0  ;;  %24 = vrot.lane.b32.xlu1 %v23_v2, %s40_s8  ;;  %v17_v4 = vld [vmem:[#allocation1 + $0x2] sm:$0x1]   ;;  %9 = vst.msk [vmem:[#allocation0] sm:$0x1] %vm8_vm0, %v7_v3  }
   0xe   :  { %18 = vrot.lane.b32.xlu0 %v17_v4, %s41_s9 }
  0x7c   :  { %v13_v5 = vpop.permute.xlu0 %12   ;;  %v25_v6 = vpop.permute.xlu1 %24  }
  0x7d   :  { %15 = vst.msk [vmem:[#allocation0] sm:$0x1] %vm14_vm1, %v13_v5  }
  0x80   :  { %v19_v7 = vpop.permute.xlu0 %18  }
  0x81   :  { %21 = vst.msk [vmem:[#allocation0] sm:$0x1] %vm20_vm2, %v19_v7  }
  0x82   :  { %27 = vst.msk [vmem:[#allocation0] sm:$0x1] %vm26_vm3, %v25_v6  }
  0x89   :  { %v32_v8 = vld [vmem:[#allocation0] sm:$0x1] }
  0x8a   :  { %35 = vst [vmem:[%s59_s1] sm:$0x1] %v32_v8 }

// kernel: gla_block_forward.8
= control target key start
LH: loop header
LB: loop body
LE: loop exit
PB: predicated region body
PF: predicated region fallthrough
CT: control target
= control target key end

     0   :  { %v142_v1 = vmov 0   ;;  %vm56_vm0 = vcmask 261120   ;;  %vm17_vm1 = vcmask 31744   ;;  %v143_v6 = vmov 0.0   ;;  %s192_s1 = inlined_call_operand.vmem [shape: bf16[32,132], index: 1, kind: input, shape index: {}]   ;;  %s193_s0 = inlined_call_operand.vmem [shape: bf16[16,32], index: 0, kind: input, shape index: {}]   ;;  %s194_s2 = inlined_call_operand.vmem [shape: f32[16,132], index: 2, kind: output, shape index: {}]  }
   0x1   :  { %v135_v0 = vld [vmem:[%s192_s1 + $0x14] ss:$8 sps:$4 sm:$0xff]   ;;  %92 = vmatprep.mubr.bf16.mxu0 %v142_v1  ;;  %v137_v2 = vld [vmem:[%s192_s1 + $0x10] ss:$8 sps:$4 sm:$0xff]   ;;  %v138_v3 = vld [vmem:[%s192_s1 + $0x4] ss:$8 sps:$4 sm:$0xff]  }
   0x2   :  { %72 = vmatprep.subr.bf16.mxu0 %v135_v0  ;;  %v140_v4 = vld [vmem:[%s192_s1] ss:$8 sps:$4 sm:$0xff]   ;;  %18 = vst.msk [vmem:[#allocation2 + $0x8] sm:$0xff] %vm17_vm1, %v143_v6  ;;  %20 = vst.msk [vmem:[#allocation2 + $0x18] sm:$0xff] %vm17_vm1, %v143_v6 }
   0x3   :  { %73 = vmatpush1.bf16.msra.mxu0 %v137_v2  ;;  %v141_v5 = vld [vmem:[%s193_s0] sm:$0xff]  }
   0x4   :  { %74 = vmatprep.subr.bf16.mxu0 %v138_v3 }
   0x7   :  { %75 = vmatpush1.bf16.msra.mxu0 %v140_v4 }
   0x9   :  { %v22_v8 = vld [vmem:[#allocation2 + $0x8] sm:$0xff]  ;;  %v24_v12 = vld [vmem:[#allocation2 + $0x18] sm:$0xff] }
   0xa   :  { %132 = vmatmul.mubr.msk.bf16.vlgmr.msra.gmra.mxu0 %vm56_vm0, %v141_v5 }
  0xca   :  { %v94_v7 = vpop.f32.mrf.mxu0 }
  0xcb   :  { %119 = vst [vmem:[%s194_s2] sm:$0xff] %v94_v7 }
  0xcc   :  { %v96_v9 = vpop.f32.mrf.mxu0 }
  0xcd   :  { %v104_v10 = vadd.f32 %v96_v9, %v22_v8 }
  0xce   :  { %v98_v11 = vpop.f32.mrf.mxu0 }
  0xcf   :  { %109 = vst.msk [vmem:[#allocation2 + $0x8] sm:$0xff] %vm17_vm1, %v104_v10  ;;  %121 = vst [vmem:[%s194_s2 + $0x10] sm:$0xff] %v98_v11 }
  0xd0   :  { %v100_v13 = vpop.f32.mrf.mxu0 }
  0xd1   :  { %v106_v14 = vadd.f32 %v100_v13, %v24_v12 }
  0xd3   :  { %111 = vst.msk [vmem:[#allocation2 + $0x18] sm:$0xff] %vm17_vm1, %v106_v14 }
  0xd6   :  { %v116_v15 = vld [vmem:[#allocation2 + $0x8] sm:$0xff] }
  0xd7   :  { %120 = vst.msk [vmem:[%s194_s2 + $0x8] sm:$0xff] %vm17_vm1, %v116_v15 }
  0xda   :  { %v118_v16 = vld [vmem:[#allocation2 + $0x18] sm:$0xff] }
  0xdb   :  { %122 = vst.msk [vmem:[%s194_s2 + $0x18] sm:$0xff] %vm17_vm1, %v118_v16 }

// kernel: gla_block_forward.7
= control target key start
LH: loop header
LB: loop body
LE: loop exit
PB: predicated region body
PF: predicated region fallthrough
CT: control target
= control target key end

     0   :  { %vm15_vm0 = vcmask 261120   ;;  %s85_s0 = inlined_call_operand.vmem [shape: f32[16,32], index: 0, kind: input, shape index: {}]   ;;  %s86_s1 = inlined_call_operand.vmem [shape: f32[1,32], index: 1, kind: input, shape index: {}]   ;;  %s87_s2 = inlined_call_operand.vmem [shape: f32[16,32], index: 2, kind: output, shape index: {}]  }
   0x1   :  { %v11_v0 = vld [vmem:[%s85_s0] sm:$0xff]  ;;  %v12_v1 = vld [vmem:[%s85_s0 + $0x8] sm:$0xff] }
   0x2   :  { %v13_v2 = vmul.f32 %v11_v0, %v11_v0  ;;  %v14_v3 = vmul.f32 %v12_v1, %v12_v1  ;;  %v46_v13 = vld [vmem:[%s86_s1] ss:$0 sm:$0xff] }
   0x4   :  { %v16_v4 = vsel %vm15_vm0, %v13_v2, 0.0  ;;  %v19_v5 = vsel %vm15_vm0, %v14_v3, 0.0 }
   0x5   :  { %17 = vadd.xlane.f32.xlu0 %v16_v4 }
   0x9   :  { %20 = vadd.xlane.f32.xlu0 %v19_v5 }
  0x8e   :  { %v18_v6 = vpop.xlane.xlu0 %17 }
  0x8f   :  { %v23_v7 = vmul.f32 0.03125, %v18_v6 }
  0x91   :  { %v25_v8 = vadd.f32 1e-05, %v23_v7 }
  0x92   :  { %v21_v9 = vpop.xlane.xlu0 %20 }
  0x93   :  { %47 = vrsqrt.f32 %v25_v8  ;;  %v24_v10 = vmul.f32 0.03125, %v21_v9 }
  0x95   :  { %v26_v11 = vadd.f32 1e-05, %v24_v10 }
  0x97   :  { %49 = vrsqrt.f32 %v26_v11 }
  0xa0   :  { %v48_v12 = vpop.eup %47 }
  0xa1   :  { %v29_v14 = vmul.f32 %v48_v12, %v11_v0 }
  0xa3   :  { %v38_v15 = vmul.f32 %v46_v13, %v29_v14 }
  0xa4   :  { %v50_v16 = vpop.eup %49 }
  0xa5   :  { %40 = vst.msk [vmem:[%s87_s2] sm:$0xff] %vm15_vm0, %v38_v15  ;;  %v30_v17 = vmul.f32 %v50_v16, %v12_v1 }
  0xa7   :  { %v39_v18 = vmul.f32 %v46_v13, %v30_v17 }
  0xa9   :  { %41 = vst.msk [vmem:[%s87_s2 + $0x8] sm:$0xff] %vm15_vm0, %v39_v18 }

// kernel: gla_block_forward.9
= control target key start
LH: loop header
LB: loop body
LE: loop exit
PB: predicated region body
PF: predicated region fallthrough
CT: control target
= control target key end

     0   :  { %s938_s15 = smov 0   ;;  %s940_s16 = smov 0   ;;  %s1032_s0 = inlined_call_operand.vmem [shape: bf16[8,8,8], index: 0, kind: input, shape index: {}]   ;;  %s1033_s1 = inlined_call_operand.vmem [shape: bf16[8,8,8], index: 1, kind: input, shape index: {}]   ;;  %s1034_s2 = inlined_call_operand.vmem [shape: bf16[8,8,8], index: 2, kind: input, shape index: {}]   ;;  %s1035_s3 = inlined_call_operand.vmem [shape: f32[8,1,8], index: 3, kind: input, shape index: {}]   ;;  %s1036_s4 = inlined_call_operand.vmem [shape: f32[8,8,8], index: 4, kind: output, shape index: {}]  }
   0x1   :  { %s942_s17 = smov 0  }
   0x2 LB: > { %s26_s18 = sadd.s32 1, %s904_s16  ;;  %p797_p0 = scmp.ge.s32.totalorder %s908_s17, 1  ;;  %s908_s17 = sphi %s942_s17, %s14_s17   ;;  %s904_s16 = sphi %s940_s16, %s1038_s16   ;;  %s900_s15 = sphi %s938_s15, %s1037_s15  }
   0x3   : > { %p28_p1 = scmp.ge.s32.totalorder %s26_s18, 8  ;;  %p221_p2 = scmp.lt.s32.totalorder %s908_s17, 9 }
   0x5   : > { %s1040_s18 = smov (%p28_p1, %s26_s18), 0  ;;  %p222_p3 = pnand %p797_p0, %p221_p2 }
   0x6   : > { %p271_p4 = scmp.lt.s32.totalorder (!%p222_p3), %s900_s15, 7 }
   0x7   : > { %225 = sbr.rel (%p222_p3) target bundleno = 481 (0x1e1), region = 36 }
   0xc   : > { %v316_v0 = vlaneseq  ;;  %v910_v1 = vmov 0.0   ;;  %vm911_vm0 = vmmov 0   ;;  %vm310_vm1 = vcmask 64512   ;;  %s1042_s15 = smov (!%p271_p4, %s900_s15), 7 }
   0xd   : > { %822 = vmatprep.subr.mxu0 %v910_v1  ;;  %824 = vmatprep.mubr.msk.f32.mxu0 %vm911_vm0, %v910_v1  ;;  %311 = vst.msk [vmem:[#allocation2] sm:$0xff] %vm310_vm1, %v910_v1  ;;  %vm410_vm2 = vcmask 57344   ;;  %s297_s21 = scalar_lea.vmem %s1035_s3, %s1042_s15  ;;  %s798_s22 = sshll.u32 %s1042_s15, 2  ;;  %v912_v5 = vmov 1.0   ;;  %vm553_vm6 = vcmask 1043456  }
   0xe   : > { %v959_v2 = vshrl.u32 %v316_v0, 7  ;;  %v961_v3 = vand.u32 127, %v316_v0  ;;  %827 = vmatprep.subr.bf16.mxu1 %v910_v1  ;;  %829 = vmatprep.mubr.msk.bf16.mxu1 %vm911_vm0, %v910_v1  ;;  %v315_v6 = vld [vmem:[%s297_s21] sm:$0x1]  ;;  %s284_s25 = scalar_lea.vmem %s1033_s1, %s798_s22  ;;  %s277_s28 = scalar_lea.vmem %s1032_s0, %s798_s22 }
   0xf   : > { %v411_v8 = vsel %vm410_vm2, %v315_v6, 0.0  ;;  %v313_v10 = vld [vmem:[%s284_s25] sm:$0xf]  ;;  %s291_s5 = scalar_lea.vmem %s1034_s2, %s798_s22  ;;  %s801_s6 = sshll.u32 %s1042_s15, 3 }
  0x10   : > { %vm324_vm3 = vcmp.le.s32.totalorder %v959_v2, %v961_v3  ;;  %vm321_vm4 = vcmp.le.s32.totalorder %v961_v3, %v959_v2  ;;  %v979_v4 = vsub.s32 0, %v959_v2  ;;  %412 = vadd.xlane.f32.xlu0 %v411_v8  ;;  %v418_v11 = vsel %vm310_vm1, %v313_v10, 0  ;;  %v312_v14 = vld [vmem:[%s277_s28] sm:$0xf]  ;;  %s304_s9 = scalar_lea.vmem %s1036_s4, %s801_s6 }
  0x11   : > { %823 = vmatpush3.msk.msra.mxu0 %vm324_vm3, %v912_v5  ;;  %v802_v7 = vsel %vm321_vm4, 1.0, %v910_v1  ;;  %828 = vmatpush3.bf16.xpose.msra.mxu1 %v418_v11  ;;  %vm320_vm5 = vcmp.ge.s32.totalorder %v959_v2, %v961_v3  ;;  %v314_v16 = vld [vmem:[%s291_s5] sm:$0xf]  ;;  %v471_v24 = vunpack.c.l.bf16 %v312_v14  ;;  %v598_v25 = vunpack.c.l.bf16 %v313_v10 }
  0x12   : > { %825 = vmatmul.mubr.msk.f32.vlgmr.msra.gmra.mxu0 %vm310_vm1, %v315_v6  ;;  %v331_v9 = vrot.slane %v315_v6, %v979_v4  ;;  %833 = vmatprep.subr.mxu0 %v910_v1  ;;  %v555_v17 = vsel %vm553_vm6, %v314_v16, 0 }
  0x13   : > { %835 = vmatprep.mubr.msk.f32.mxu0 %vm911_vm0, %v910_v1  ;;  %844 = vmatprep.subr.bf16.mxu1 %v910_v1 }
  0x14   : > { %v333_v12 = vmul.f32 %v802_v7, %v331_v9  ;;  %v476_v15 = vld [vmem:[#allocation2] sm:$0xff] }
  0x15   : > { %834 = vmatpush3.msra.mxu0 %v476_v15 }
  0x16   : > { %v335_v13 = vsel %vm310_vm1, %v333_v12, 0.0  ;;  %838 = vmatprep.subr.bf16.mxu0 %v910_v1 }
  0x17   : > { %336 = vadd.xlane.f32.xlu0 %v335_v13 }
  0x18   : > { %830 = vmatmul.mubr.msk.bf16.vlgmr.msra.gmra.mxu1 %vm310_vm1, %v312_v14 }
  0x19   : > { %846 = vmatprep.mubr.msk.bf16.mxu1 %vm911_vm0, %v910_v1  ;;  %845 = vmatpush3.bf16.msra.mxu1 %v555_v17 }
  0x99   : > { %v413_v18 = vpop.xlane.xlu0 %412 }
  0x9a   : > { %v602_v19 = vrot.slane %v413_v18, %v979_v4  ;;  %v668_v54 = vmul.f32 1.442695, %v413_v18 }
  0xa0   : > { %v337_v20 = vpop.xlane.xlu0 %336 }
  0xa1   : > { %v472_v21 = vmul.f32 1.442695, %v337_v20  ;;  %v603_v22 = vsub.f32 %v602_v19, %v337_v20 }
  0xa3   : > { %878 = vpow2.f32 %v472_v21  ;;  %v604_v23 = vmul.f32 1.442695, %v603_v22 }
  0xa5   : > { %880 = vpow2.f32 %v604_v23 }
  0xb0   : > { %v879_v26 = vpop.eup %878 }
  0xb1   : > { %v474_v27 = vmul.f32 0.35355338, %v879_v26 }
  0xb2   : > { %v881_v28 = vpop.eup %880 }
  0xb3   : > { %v475_v29 = vmul.f32 %v474_v27, %v471_v24  ;;  %v606_v30 = vmul.f32 %v881_v28, %v598_v25 }
  0xb5   : > { %836 = vmatmul.mubr.msk.f32.vlgmr.msra.gmra.mxu0 %vm310_vm1, %v475_v29  ;;  %v607_v31 = vpack.c.bf16 %v606_v30, %v606_v30 }
  0xb6   : > { %839 = vmatpush3.bf16.msra.mxu0 %v555_v17  ;;  %840 = vmatprep.mubr.msk.bf16.mxu0 %vm911_vm0, %v910_v1 }
  0xb7   : > { %608 = vxpose.xlu1.c.b16.start.end [1/1] (short) (narrow) %v607_v31, 16 }
  0xd2   : > { %v406_v32 = vpop.f32.mrf.mxu0 }
  0xd3   : > { %v463_v33 = vrot.slane %v406_v32, %v979_v4 }
  0xd4   : > { %v826_v34 = vpop.f32.mrf.mxu0 }
  0xd5   : > { %v464_v35 = vsub.f32 %v337_v20, %v463_v33 }
  0xd7   : > { %v465_v36 = vsel %vm320_vm5, %v464_v35, -inf }
  0xd8   : > { %v466_v37 = vmul.f32 1.442695, %v465_v36  ;;  %v454_v38 = vpop.f32.mrf.mxu1 }
  0xda   : > { %882 = vpow2.f32 %v466_v37  ;;  %v831_v39 = vpop.f32.mrf.mxu1 }
  0xdb   : > { %884 = vpow2.f32 %v668_v54 }
  0xdc   : > { %v457_v40 = vpop.f32.mrf.mxu1 }
  0xde   : > { %v832_v41 = vpop.f32.mrf.mxu1 }
  0xe7   : > { %v883_v42 = vpop.eup %882 }
  0xe8   : > { %v468_v43 = vmul.f32 %v883_v42, %v454_v38  ;;  %v885_v55 = vpop.eup %884 }
  0xe9   : > { %v673_v56 = vrot.slane %v885_v55, %v979_v4 }
  0xea   : > { %v469_v44 = vmul.f32 0.35355338, %v468_v43 }
  0xeb   : > { %v674_v57 = vmul.f32 %v673_v56, %v476_v15 }
  0xec   : > { %v470_v45 = vpack.c.bf16 %v469_v44, %v469_v44 }
  0xee   : > { %841 = vmatmul.mubr.msk.bf16.vlgmr.msra.gmra.mxu0 %vm310_vm1, %v470_v45 }
 0x119   : > { %v616_v46 = vpop.trf.xlu1 }
 0x11a   : > { %847 = vmatmul.mubr.msk.bf16.vlgmr.msra.gmra.mxu1 %vm310_vm1, %v616_v46 }
 0x175   : > { %v546_v47 = vpop.f32.mrf.mxu0 }
 0x177   : > { %v837_v48 = vpop.f32.mrf.mxu0 }
 0x1ae   : > { %v591_v49 = vpop.f32.mrf.mxu0 }
 0x1af   : > { %v592_v50 = vadd.f32 %v591_v49, %v546_v47 }
 0x1b0   : > { %v842_v51 = vpop.f32.mrf.mxu0 }
 0x1b1   : > { %597 = vst.msk [vmem:[%s304_s9] sm:$0xff] %vm310_vm1, %v592_v50 }
 0x1b2   : > { %v594_v52 = vpop.f32.mrf.mxu0 }
 0x1b4   : > { %v843_v53 = vpop.f32.mrf.mxu0 }
 0x1da   : > { %v661_v58 = vpop.f32.mrf.mxu1 }
 0x1db   : > { %v675_v59 = vadd.f32 %v674_v57, %v661_v58 }
 0x1dc   : > { %v848_v60 = vpop.f32.mrf.mxu1 }
 0x1dd   : > { %676 = vst.msk [vmem:[#allocation2] sm:$0xff] %vm310_vm1, %v675_v59 }
 0x1de   : > { %v664_v61 = vpop.f32.mrf.mxu1 }
 0x1e0   : > { %v849_v62 = vpop.f32.mrf.mxu1 }
 0x1e1 PF: > { %s14_s17 = sadd.s32 1, %s908_s17   ;;  %s1037_s15 = smov %s904_s16 }
 0x1e2   : > { %p11_p5 = scmp.ge.s32.totalorder %s14_s17, 10   ;;  %s1038_s16 = smov %s1040_s18 }
 0x1e4   :  { %13 = sbr.rel (!%p11_p5) target bundleno = 2 (0x2), region = 79 }

// kernel: gla_block_forward.10
= control target key start
LH: loop header
LB: loop body
LE: loop exit
PB: predicated region body
PF: predicated region fallthrough
CT: control target
= control target key end

     0   :  { %vm27_vm0 = vcmask 261120   ;;  %vm115_vm1 = vcmask 31744   ;;  %s371_s3 = inlined_call_operand.vmem [shape: f32[32,4], index: 3, kind: input, shape index: {}]   ;;  %s372_s0 = inlined_call_operand.vmem [shape: f32[16,32], index: 0, kind: input, shape index: {}]   ;;  %s373_s1 = inlined_call_operand.vmem [shape: f32[16,32], index: 1, kind: input, shape index: {}]   ;;  %s374_s2 = inlined_call_operand.vmem [shape: f32[1,32], index: 2, kind: input, shape index: {}]   ;;  %s375_s4 = inlined_call_operand.vmem [shape: f32[16,32], index: 4, kind: output, shape index: {}]  }
   0x1   :  { %v24_v0 = vld [vmem:[%s371_s3 + $0x18] sm:$0xff]  ;;  %v23_v1 = vld [vmem:[%s371_s3 + $0x10] sm:$0xff]  ;;  %v17_v2 = vld [vmem:[%s372_s0] sm:$0xff] }
   0x2   :  { %265 = vmatprep.subr.mxu0 %v24_v0  ;;  %v22_v3 = vld [vmem:[%s371_s3 + $0x8] sm:$0xff]  ;;  %v25_v5 = vmul.f32 %v17_v2, %v17_v2  ;;  %v21_v6 = vld [vmem:[%s371_s3] sm:$0xff]  ;;  %276 = vmatprep.subr.msk.mxu1 %vm115_vm1, %v24_v0 }
   0x3   :  { %266 = vmatpush3.msra.mxu0 %v24_v0  ;;  %v18_v4 = vld [vmem:[%s372_s0 + $0x8] sm:$0xff]  ;;  %277 = vmatpush3.xpose.msk.msra.mxu1 %vm115_vm1, %v24_v0  ;;  %v19_v17 = vld [vmem:[%s373_s1] sm:$0xff] }
   0x4   :  { %267 = vmatprep.subr.mxu0 %v23_v1  ;;  %273 = vmatprep.mubr.msk.f32.mxu0 %vm27_vm0, %v25_v5  ;;  %v26_v7 = vmul.f32 %v18_v4, %v18_v4  ;;  %v20_v16 = vld [vmem:[%s373_s1 + $0x8] sm:$0xff]  ;;  %v251_v19 = vmul.f32 -1.442695, %v19_v17  ;;  %v250_v27 = vld [vmem:[%s374_s2] ss:$0 sm:$0xff] }
   0x5   :  { %268 = vmatpush3.msra.mxu0 %v23_v1  ;;  %278 = vmatprep.subr.msk.mxu1 %vm115_vm1, %v23_v1  ;;  %v252_v18 = vmul.f32 -1.442695, %v20_v16 }
   0x6   :  { %269 = vmatprep.subr.mxu0 %v22_v3 }
   0x7   :  { %270 = vmatpush3.msra.mxu0 %v22_v3  ;;  %279 = vmatpush3.xpose.msk.msra.mxu1 %vm115_vm1, %v23_v1 }
   0x8   :  { %271 = vmatprep.subr.mxu0 %v21_v6  ;;  %280 = vmatprep.subr.msk.mxu1 %vm115_vm1, %v22_v3 }
   0x9   :  { %272 = vmatpush3.msra.mxu0 %v21_v6 }
   0xa   :  { %274 = vmatmul.mubr.msk.f32.vlgmr.msra.gmra.mxu0 %vm27_vm0, %v26_v7 }
   0xb   :  { %281 = vmatpush3.xpose.msk.msra.mxu1 %vm115_vm1, %v22_v3 }
   0xc   :  { %282 = vmatprep.subr.msk.mxu1 %vm115_vm1, %v21_v6 }
   0xf   :  { %283 = vmatpush3.xpose.msk.msra.mxu1 %vm115_vm1, %v21_v6 }
  0xca   :  { %v275_v8 = vpop.f32.mrf.mxu0 }
  0xcb   :  { %v110_v9 = vmul.f32 0.125, %v275_v8 }
  0xcc   :  { %v100_v10 = vpop.f32.mrf.mxu0 }
  0xcd   :  { %v109_v11 = vmul.f32 0.125, %v100_v10  ;;  %v112_v12 = vadd.f32 1e-05, %v110_v9 }
  0xcf   :  { %v111_v13 = vadd.f32 1e-05, %v109_v11 }
  0xd1   :  { %287 = vrsqrt.f32 %v111_v13 }
  0xd2   :  { %289 = vrsqrt.f32 %v112_v12 }
  0xd3   :  { %291 = vpow2.f32 %v252_v18 }
  0xd4   :  { %293 = vpow2.f32 %v251_v19 }
  0xde   :  { %v288_v14 = vpop.eup %287 }
  0xdf   :  { %v290_v15 = vpop.eup %289  ;;  %284 = vmatprep.mubr.msk.f32.mxu1 %vm115_vm1, %v288_v14 }
  0xe0   :  { %285 = vmatmul.mubr.msk.f32.vlgmr.msra.gmra.mxu1 %vm115_vm1, %v290_v15  ;;  %v292_v20 = vpop.eup %291 }
  0xe1   :  { %v294_v21 = vpop.eup %293  ;;  %v227_v22 = vadd.f32 1.0, %v292_v20 }
  0xe2   :  { %v226_v23 = vadd.f32 1.0, %v294_v21 }
  0xe3   :  { %295 = vrcp.f32 %v227_v22 }
  0xe4   :  { %297 = vrcp.f32 %v226_v23 }
  0xf0   :  { %v296_v24 = vpop.eup %295 }
  0xf1   :  { %v298_v25 = vpop.eup %297  ;;  %v233_v29 = vmul.f32 %v296_v24, %v20_v16 }
  0xf2   :  { %v232_v33 = vmul.f32 %v298_v25, %v19_v17 }
 0x1a0   :  { %v286_v26 = vpop.f32.mrf.mxu1 }
 0x1a1   :  { %v210_v28 = vmul.f32 %v286_v26, %v18_v4 }
 0x1a2   :  { %v200_v30 = vpop.f32.mrf.mxu1 }
 0x1a3   :  { %v219_v31 = vmul.f32 %v250_v27, %v210_v28  ;;  %v209_v32 = vmul.f32 %v200_v30, %v17_v2 }
 0x1a5   :  { %v235_v34 = vmul.f32 %v233_v29, %v219_v31  ;;  %v218_v35 = vmul.f32 %v250_v27, %v209_v32 }
 0x1a7   :  { %237 = vst.msk [vmem:[%s375_s4 + $0x8] sm:$0xff] %vm27_vm0, %v235_v34  ;;  %v234_v36 = vmul.f32 %v232_v33, %v218_v35 }
 0x1a9   :  { %236 = vst.msk [vmem:[%s375_s4] sm:$0xff] %vm27_vm0, %v234_v36 }

// kernel: gla_block_forward.12
= control target key start
LH: loop header
LB: loop body
LE: loop exit
PB: predicated region body
PF: predicated region fallthrough
CT: control target
= control target key end

     0   :  { %vm22_vm0 = vcmask 261120   ;;  %s124_s0 = inlined_call_operand.vmem [shape: f32[16,32], index: 0, kind: input, shape index: {}]   ;;  %s125_s1 = inlined_call_operand.vmem [shape: f32[16,32], index: 1, kind: input, shape index: {}]   ;;  %s126_s4 = inlined_call_operand.vmem [shape: f32[16,32], index: 4, kind: output, shape index: {1}]   ;;  %s127_s2 = inlined_call_operand.vmem [shape: f32[1,32], index: 2, kind: input, shape index: {}]   ;;  %s128_s3 = inlined_call_operand.vmem [shape: f32[16,32], index: 3, kind: output, shape index: {0}]  }
   0x1   :  { %v16_v0 = vld [vmem:[%s124_s0] sm:$0xff]  ;;  %v17_v2 = vld [vmem:[%s124_s0 + $0x8] sm:$0xff] }
   0x2   :  { %v18_v1 = vld [vmem:[%s125_s1] sm:$0xff]  ;;  %v19_v4 = vld [vmem:[%s125_s1 + $0x8] sm:$0xff] }
   0x3   :  { %v20_v3 = vadd.f32 %v18_v1, %v16_v0  ;;  %v21_v5 = vadd.f32 %v19_v4, %v17_v2  ;;  %v61_v17 = vld [vmem:[%s127_s2] ss:$0 sm:$0xff] }
   0x5   :  { %v25_v6 = vmul.f32 %v20_v3, %v20_v3  ;;  %23 = vst.msk [vmem:[%s126_s4] sm:$0xff] %vm22_vm0, %v20_v3  ;;  %24 = vst.msk [vmem:[%s126_s4 + $0x8] sm:$0xff] %vm22_vm0, %v21_v5  ;;  %v26_v7 = vmul.f32 %v21_v5, %v21_v5 }
   0x7   :  { %v27_v8 = vsel %vm22_vm0, %v25_v6, 0.0  ;;  %v30_v9 = vsel %vm22_vm0, %v26_v7, 0.0 }
   0x8   :  { %28 = vadd.xlane.f32.xlu0 %v27_v8 }
   0xc   :  { %31 = vadd.xlane.f32.xlu0 %v30_v9 }
  0x91   :  { %v29_v10 = vpop.xlane.xlu0 %28 }
  0x92   :  { %v34_v11 = vmul.f32 0.03125, %v29_v10 }
  0x94   :  { %v36_v12 = vadd.f32 1e-05, %v34_v11 }
  0x95   :  { %v32_v13 = vpop.xlane.xlu0 %31 }
  0x96   :  { %62 = vrsqrt.f32 %v36_v12  ;;  %v35_v14 = vmul.f32 0.03125, %v32_v13 }
  0x98   :  { %v37_v15 = vadd.f32 1e-05, %v35_v14 }
  0x9a   :  { %64 = vrsqrt.f32 %v37_v15 }
  0xa3   :  { %v63_v16 = vpop.eup %62 }
  0xa4   :  { %v40_v18 = vmul.f32 %v63_v16, %v20_v3 }
  0xa6   :  { %v49_v19 = vmul.f32 %v61_v17, %v40_v18 }
  0xa7   :  { %v65_v20 = vpop.eup %64 }
  0xa8   :  { %51 = vst.msk [vmem:[%s128_s3] sm:$0xff] %vm22_vm0, %v49_v19  ;;  %v41_v21 = vmul.f32 %v65_v20, %v21_v5 }
  0xaa   :  { %v50_v22 = vmul.f32 %v61_v17, %v41_v21 }
  0xac   :  { %52 = vst.msk [vmem:[%s128_s3 + $0x8] sm:$0xff] %vm22_vm0, %v50_v22 }

// kernel: gla_block_forward.11
= control target key start
LH: loop header
LB: loop body
LE: loop exit
PB: predicated region body
PF: predicated region fallthrough
CT: control target
= control target key end

     0   :  { %vm16_vm0 = vcmask 261120   ;;  %v124_v0 = vmov 0.0   ;;  %vm125_vm1 = vmmov 0   ;;  %s163_s1 = inlined_call_operand.vmem [shape: bf16[32,32], index: 1, kind: input, shape index: {}]   ;;  %s164_s0 = inlined_call_operand.vmem [shape: bf16[16,32], index: 0, kind: input, shape index: {}]   ;;  %s165_s2 = inlined_call_operand.vmem [shape: f32[16,32], index: 2, kind: output, shape index: {}]  }
   0x1   :  { %111 = vmatprep.subr.bf16.mxu0 %v124_v0  ;;  %v121_v1 = vld [vmem:[%s163_s1 + $0x8] sm:$0xff]   ;;  %115 = vmatprep.mubr.msk.bf16.mxu0 %vm125_vm1, %v124_v0  ;;  %17 = vst.msk [vmem:[#allocation2] sm:$0xff] %vm16_vm0, %v124_v0  ;;  %18 = vst.msk [vmem:[#allocation2 + $0x8] sm:$0xff] %vm16_vm0, %v124_v0  ;;  %v122_v2 = vld [vmem:[%s163_s1] sm:$0xff]  }
   0x2   :  { %112 = vmatpush3.bf16.msra.mxu0 %v121_v1  ;;  %v123_v3 = vld [vmem:[%s164_s0] sm:$0xff]  }
   0x3   :  { %113 = vmatprep.subr.bf16.mxu0 %v124_v0 }
   0x6   :  { %114 = vmatpush3.bf16.msra.mxu0 %v122_v2 }
   0x8   :  { %v19_v4 = vld [vmem:[#allocation2] sm:$0xff]  ;;  %v20_v8 = vld [vmem:[#allocation2 + $0x8] sm:$0xff] }
   0x9   :  { %116 = vmatmul.mubr.msk.bf16.vlgmr.msra.gmra.mxu0 %vm16_vm0, %v123_v3 }
  0xc9   :  { %v82_v5 = vpop.f32.mrf.mxu0 }
  0xca   :  { %v89_v6 = vadd.f32 %v82_v5, %v19_v4 }
  0xcb   :  { %v117_v7 = vpop.f32.mrf.mxu0 }
  0xcc   :  { %91 = vst.msk [vmem:[#allocation2] sm:$0xff] %vm16_vm0, %v89_v6 }
  0xcd   :  { %v85_v9 = vpop.f32.mrf.mxu0 }
  0xce   :  { %v90_v10 = vadd.f32 %v85_v9, %v20_v8 }
  0xcf   :  { %v118_v11 = vpop.f32.mrf.mxu0 }
  0xd0   :  { %92 = vst.msk [vmem:[#allocation2 + $0x8] sm:$0xff] %vm16_vm0, %v90_v10 }
  0xd3   :  { %v96_v12 = vld [vmem:[#allocation2] sm:$0xff] }
  0xd4   :  { %98 = vst.msk [vmem:[%s165_s2] sm:$0xff] %vm16_vm0, %v96_v12 }
  0xd7   :  { %v97_v13 = vld [vmem:[#allocation2 + $0x8] sm:$0xff] }
  0xd8   :  { %99 = vst.msk [vmem:[%s165_s2 + $0x8] sm:$0xff] %vm16_vm0, %v97_v13 }

// kernel: gla_block_forward.13
= control target key start
LH: loop header
LB: loop body
LE: loop exit
PB: predicated region body
PF: predicated region fallthrough
CT: control target
= control target key end

     0   :  { %v378_v1 = vmov 0.0   ;;  %vm379_vm0 = vmmov 0   ;;  %vm26_vm1 = vcmask 261120   ;;  %s457_s0 = inlined_call_operand.vmem [shape: bf16[16,32], index: 0, kind: input, shape index: {}]   ;;  %s458_s1 = inlined_call_operand.vmem [shape: bf16[32,64], index: 1, kind: input, shape index: {}]   ;;  %s459_s2 = inlined_call_operand.vmem [shape: bf16[32,64], index: 2, kind: input, shape index: {}]   ;;  %s460_s3 = inlined_call_operand.vmem [shape: bf16[64,32], index: 3, kind: input, shape index: {}]   ;;  %s461_s4 = inlined_call_operand.vmem [shape: f32[16,32], index: 4, kind: input, shape index: {}]   ;;  %s462_s5 = inlined_call_operand.hbm [shape: f32[16,32], index: 5, kind: output, shape index: {}]  }
   0x1   :  { %v339_v0 = vld [vmem:[%s458_s1 + $0x8] sm:$0xff]   ;;  %306 = vmatprep.subr.bf16.mxu1 %v378_v1  ;;  %322 = vmatprep.subr.bf16.mxu0 %v378_v1  ;;  %v340_v2 = vld [vmem:[%s458_s1] sm:$0xff]   ;;  %27 = vst.msk [vmem:[#allocation2] sm:$0xff] %vm26_vm1, %v378_v1  ;;  %28 = vst.msk [vmem:[#allocation2 + $0x8] sm:$0xff] %vm26_vm1, %v378_v1 }
   0x2   :  { %307 = vmatpush3.bf16.msra.mxu1 %v339_v0  ;;  %310 = vmatprep.mubr.msk.bf16.mxu1 %vm379_vm0, %v378_v1  ;;  %v341_v3 = vld [vmem:[%s457_s0] sm:$0xff]   ;;  %v342_v4 = vld [vmem:[%s459_s2 + $0x8] sm:$0xff]  }
   0x3   :  { %308 = vmatprep.subr.bf16.mxu1 %v378_v1  ;;  %330 = vmatprep.mubr.msk.bf16.mxu0 %vm379_vm0, %v378_v1 }
   0x6   :  { %309 = vmatpush3.bf16.msra.mxu1 %v340_v2 }
   0x7   :  { %314 = vmatprep.subr.bf16.mxu1 %v378_v1 }
   0x8   :  { %10 = vsyncpa [#allocation4], 0  ;;  %v343_v5 = vld [vmem:[%s459_s2] sm:$0xff]   ;;  %v344_v6 = vld [vmem:[%s460_s3 + $0x18] sm:$0xff]   ;;  %vm205_vm2 = vcmask 523264   ;;  %s380_s9 = smov [#allocation3]  }
   0x9   :  { %311 = vmatmul.mubr.msk.bf16.vlgmr.msra.gmra.mxu1 %vm26_vm1, %v341_v3  ;;  %323 = vmatpush3.bf16.msra.mxu0 %v344_v6  ;;  %v345_v7 = vld [vmem:[%s460_s3 + $0x10] sm:$0xff]   ;;  %v346_v8 = vld [vmem:[%s460_s3 + $0x8] sm:$0xff]   ;;  %v347_v9 = vld [vmem:[%s460_s3] sm:$0xff]   ;;  %s270_s10 = sshll.u32 %s380_s9, 4  ;;  %s271_s10 = int_to_ptr.vmem [resolvable:$true] %s270_s10 }
   0xa   :  { %315 = vmatpush3.bf16.msra.mxu1 %v342_v4  ;;  %318 = vmatprep.mubr.msk.bf16.mxu1 %vm379_vm0, %v378_v1  ;;  %v171_v31 = vld [vmem:[#allocation2] sm:$0xff]  ;;  %v172_v35 = vld [vmem:[#allocation2 + $0x8] sm:$0xff]  ;;  %s356_s13 = scalar_lea.vmem %s271_s10, 256  ;;  %p361_p1 = scmp.lt.s32.totalorder %s271_s10, %s271_s10 }
   0xb   :  { %316 = vmatprep.subr.bf16.mxu1 %v378_v1  ;;  %324 = vmatprep.subr.bf16.mxu0 %v378_v1  ;;  %v259_v39 = vld [vmem:[%s461_s4] sm:$0xff]  ;;  %v260_v42 = vld [vmem:[%s461_s4 + $0x8] sm:$0xff]  ;;  %p357_p0 = scmp.ne.s32.totalorder %s271_s10, %s356_s13  ;;  %p362_p2 = scmp.lt.s32.totalorder %s356_s13, %s356_s13 }
   0xd   :  { %325 = vmatpush3.bf16.msra.mxu0 %v345_v7  ;;  %p363_p3 = por %p362_p2, %p361_p1 }
   0xe   :  { %317 = vmatpush3.bf16.msra.mxu1 %v343_v5  ;;  %326 = vmatprep.subr.bf16.mxu0 %v378_v1 }
   0xf   :  { %p364_p4 = pnand %p363_p3, %p357_p0 }
  0x11   :  { %319 = vmatmul.mubr.msk.bf16.vlgmr.msra.gmra.mxu1 %vm26_vm1, %v341_v3  ;;  %327 = vmatpush3.bf16.msra.mxu0 %v346_v8 }
  0x12   :  { %328 = vmatprep.subr.bf16.mxu0 %v378_v1 }
  0x15   :  { %329 = vmatpush3.bf16.msra.mxu0 %v347_v9 }
  0xc9   :  { %v90_v10 = vpop.f32.mrf.mxu1 }
  0xca   :  { %v288_v11 = vmul.f32 -1.442695, %v90_v10 }
  0xcb   :  { %v312_v12 = vpop.f32.mrf.mxu1 }
  0xcc   :  { %348 = vpow2.f32 %v288_v11 }
  0xcd   :  { %v93_v13 = vpop.f32.mrf.mxu1 }
  0xce   :  { %v289_v14 = vmul.f32 -1.442695, %v93_v13 }
  0xcf   :  { %v313_v15 = vpop.f32.mrf.mxu1 }
  0xd0   :  { %350 = vpow2.f32 %v289_v14 }
  0xd1   :  { %v147_v16 = vpop.f32.mrf.mxu1 }
  0xd3   :  { %v320_v17 = vpop.f32.mrf.mxu1 }
  0xd5   :  { %v150_v18 = vpop.f32.mrf.mxu1 }
  0xd7   :  { %v321_v19 = vpop.f32.mrf.mxu1 }
  0xd9   :  { %v349_v20 = vpop.eup %348 }
  0xda   :  { %v160_v21 = vadd.f32 1.0, %v349_v20 }
  0xdc   :  { %352 = vrcp.f32 %v160_v21 }
  0xdd   :  { %v351_v22 = vpop.eup %350 }
  0xde   :  { %v161_v23 = vadd.f32 1.0, %v351_v22 }
  0xe0   :  { %354 = vrcp.f32 %v161_v23 }
  0xe9   :  { %v353_v24 = vpop.eup %352 }
  0xea   :  { %v166_v25 = vmul.f32 %v353_v24, %v90_v10 }
  0xec   :  { %v168_v28 = vmul.f32 %v166_v25, %v147_v16 }
  0xed   :  { %v355_v26 = vpop.eup %354 }
  0xee   :  { %v167_v27 = vmul.f32 %v355_v26, %v93_v13 }
  0xf0   :  { %v169_v29 = vmul.f32 %v167_v27, %v150_v18 }
  0xf2   :  { %v170_v30 = vpack.c.bf16 %v169_v29, %v168_v28 }
  0xf4   :  { %331 = vmatmul.mubr.msk.bf16.vlgmr.msra.gmra.mxu0 %vm205_vm2, %v170_v30 }
 0x1b4   :  { %v243_v32 = vpop.f32.mrf.mxu0 }
 0x1b5   :  { %v250_v33 = vadd.f32 %v243_v32, %v171_v31 }
 0x1b6   :  { %v332_v34 = vpop.f32.mrf.mxu0 }
 0x1b7   :  { %252 = vst.msk [vmem:[#allocation2] sm:$0xff] %vm26_vm1, %v250_v33 }
 0x1b8   :  { %v246_v36 = vpop.f32.mrf.mxu0 }
 0x1b9   :  { %v251_v37 = vadd.f32 %v246_v36, %v172_v35 }
 0x1ba   :  { %v333_v38 = vpop.f32.mrf.mxu0 }
 0x1bb   :  { %253 = vst.msk [vmem:[#allocation2 + $0x8] sm:$0xff] %vm26_vm1, %v251_v37 }
 0x1be   :  { %v257_v40 = vld [vmem:[#allocation2] sm:$0xff] }
 0x1bf   :  { %v261_v41 = vadd.f32 %v259_v39, %v257_v40 }
 0x1c1   :  { %263 = vst.msk [vmem:[#allocation3] sm:$0xff] %vm26_vm1, %v261_v41 }
 0x1c2   :  { %v258_v43 = vld [vmem:[#allocation2 + $0x8] sm:$0xff] }
 0x1c3   :  { %v262_v44 = vadd.f32 %v260_v42, %v258_v43 }
 0x1c5   :  { %264 = vst.msk [vmem:[#allocation3 + $0x8] sm:$0xff] %vm26_vm1, %v262_v44 }
 0x1c6   :  { %367 = shalt.err (!%p364_p4)
}
 0x1c7   :  { %s381_s14 = smov 128   ;;  %s382_s15 = smov 8  }
 0x1c8   :  { %276 = dma.vmem_to_hbm [thread:$0]  %s271_s10, 256, %s462_s5, [#allocation4], %s381_s14, %s381_s14, %s382_s15  }
 0x1c9   :  { %376 = dma.done.wait [#allocation4], 256  }
 0x1ca   :  { %377 = vsyncadd [#allocation4], 4294967040 }
 0x1cb   :  { %280 = vsyncpa [#allocation4], 1 }

</bundles_post_ra>
